<compile_context>
chip_gen: v7x
topology: tpu7x:2x2x1
jax: 0.10.0
libtpu: 0.0.40
codegen_flags: <defaults>
</compile_context>

<pallas_src>
import jax
import jax.numpy as jnp
from jax.experimental import pallas as pl
from jax.experimental.pallas import tpu as pltpu

SMOOTH_NR = 1e-5   # MONAI DiceLoss defaults
SMOOTH_DR = 1e-5


def _dice_ce_kernel(x_ref, t_ref, dice_out_ref, ce_out_ref,
                    inter_ref, pred_ref, grnd_ref, ce_ref):
    """Grid = (batch, hw_tile); hw_tile is the fast ("arbitrary") axis.

    x_ref, t_ref : (1, C, TR, 128) logits / binary targets for one pixel tile
    dice_out_ref : (1, 1, 128)     per-batch sum_c dice(b, c)   (lane-broadcast)
    ce_out_ref   : (1, 1, 128)     per-batch sum_pix ce(b, pix) (lane-broadcast)
    inter/pred/grnd_ref : (C, TR, 128) f32 elementwise running sums (scratch)
    ce_ref       : (TR, 128) f32 elementwise running sum (scratch)
    """
    s = pl.program_id(1)
    ns = pl.num_programs(1)
    C = x_ref.shape[1]

    @pl.when(s == 0)
    def _init():
        inter_ref[...] = jnp.zeros_like(inter_ref)
        pred_ref[...] = jnp.zeros_like(pred_ref)
        grnd_ref[...] = jnp.zeros_like(grnd_ref)
        ce_ref[...] = jnp.zeros_like(ce_ref)

    # Load each channel once as a dense (TR, 128) slab (full vreg utilization).
    xs = [x_ref[0, c].astype(jnp.float32) for c in range(C)]
    ts = [t_ref[0, c].astype(jnp.float32) for c in range(C)]

    # ---- Dice statistics: pure elementwise accumulation (VPU + EUP only) ----
    for c in range(C):
        p = 0.5 * (1.0 + jnp.tanh(0.5 * xs[c]))          # sigmoid, 1 EUP push
        inter_ref[c] = inter_ref[c] + p * ts[c]
        pred_ref[c] = pred_ref[c] + p
        grnd_ref[c] = grnd_ref[c] + ts[c]

    # ---- Soft-label CE: channel log-softmax via unrolled running max/sum ----
    m = xs[0]
    for c in range(1, C):
        m = jnp.maximum(m, xs[c])
    se = jnp.exp(xs[0] - m)
    for c in range(1, C):
        se = se + jnp.exp(xs[c] - m)
    lse = m + jnp.log(se)
    ce = ts[0] * (lse - xs[0])
    for c in range(1, C):
        ce = ce + ts[c] * (lse - xs[c])
    ce_ref[...] = ce_ref[...] + ce

    # ---- Finalize once per batch element (all reductions + output store) ----
    @pl.when(s == ns - 1)
    def _finalize():
        dice_b = None
        for c in range(C):
            ic = jnp.sum(inter_ref[c], keepdims=True)    # (1, 1)
            po = jnp.sum(pred_ref[c], keepdims=True)     # (1, 1)
            go = jnp.sum(grnd_ref[c], keepdims=True)     # (1, 1)
            d = 1.0 - (2.0 * ic + SMOOTH_NR) / (po + go + SMOOTH_DR)
            dice_b = d if dice_b is None else dice_b + d
        ce_b = jnp.sum(ce_ref[...], keepdims=True)       # (1, 1)
        dice_out_ref[0] = jnp.broadcast_to(dice_b, (1, 128))
        ce_out_ref[0] = jnp.broadcast_to(ce_b, (1, 128))


def _choose_tile_rows(s_rows, max_rows=64):
    """Largest pixel-row tile that divides s_rows and obeys the (8,128) block rule."""
    if s_rows <= max_rows:
        return s_rows                      # full extent -> always legal
    for tr in range(max_rows, 7, -1):
        if s_rows % tr == 0 and tr % 8 == 0:
            return tr
    return s_rows                          # fallback: full extent (still legal)


def dice_ce_loss(predicted, target):
    """predicted, target: (B, C, H, W) arrays (logits / binary labels)."""
    B, C, H, W = predicted.shape
    HW = H * W
    assert HW % 128 == 0, "spatial size H*W must be a multiple of 128 for this kernel"
    S = HW // 128                          # 128-lane pixel rows per channel
    TR = _choose_tile_rows(S)
    n_tiles = S // TR

    x = predicted.reshape(B, C, S, 128)
    # Binary labels are exact in bf16 -> 2 bytes/elem of HBM traffic instead of 4.
    t = target.reshape(B, C, S, 128).astype(jnp.bfloat16)

    dice_part, ce_part = pl.pallas_call(
        _dice_ce_kernel,
        out_shape=(jax.ShapeDtypeStruct((B, 1, 128), jnp.float32),
                   jax.ShapeDtypeStruct((B, 1, 128), jnp.float32)),
        grid_spec=pltpu.PrefetchScalarGridSpec(
            num_scalar_prefetch=0,
            grid=(B, n_tiles),
            in_specs=[pl.BlockSpec((1, C, TR, 128), lambda b, s: (b, 0, s, 0)),
                      pl.BlockSpec((1, C, TR, 128), lambda b, s: (b, 0, s, 0))],
            out_specs=[pl.BlockSpec((1, 1, 128), lambda b, s: (b, 0, 0)),
                       pl.BlockSpec((1, 1, 128), lambda b, s: (b, 0, 0))],
            scratch_shapes=[pltpu.VMEM((C, TR, 128), jnp.float32),   # inter
                            pltpu.VMEM((C, TR, 128), jnp.float32),   # pred_o
                            pltpu.VMEM((C, TR, 128), jnp.float32),   # grnd_o
                            pltpu.VMEM((TR, 128), jnp.float32)],     # ce
        ),
        compiler_params=pltpu.CompilerParams(
            dimension_semantics=("parallel", "arbitrary")),
    )(x, t)

    # Final (tiny) normalizations in plain JAX.
    dice_loss = jnp.sum(dice_part[:, 0, 0]) / (B * C)    # DiceLoss mean over (B, C)
    ce_loss = jnp.sum(ce_part[:, 0, 0]) / (B * HW)       # CrossEntropy mean over (B, H, W)
    return dice_loss + ce_loss                           # lambda_dice * dice + lambda_ce * ce


def dice_ce_loss_ref(predicted, target):
    """Pure-JAX reference mirroring MONAI DiceCELoss(to_onehot_y=False, sigmoid=True)."""
    x = predicted.astype(jnp.float32)
    t = target.astype(jnp.float32)
    p = jax.nn.sigmoid(x)
    axes = (2, 3)
    inter = jnp.sum(p * t, axis=axes)
    denom = jnp.sum(p, axis=axes) + jnp.sum(t, axis=axes)
    dice = jnp.mean(1.0 - (2.0 * inter + SMOOTH_NR) / (denom + SMOOTH_DR))
    logp = jax.nn.log_softmax(x, axis=1)
    ce = jnp.mean(jnp.sum(-t * logp, axis=1))
    return dice + ce


if __name__ == "__main__":
    key = jax.random.PRNGKey(0)
    k1, k2 = jax.random.split(key)
    B, C, H, W = 2, 4, 16, 16
    predicted = jax.random.normal(k1, (B, C, H, W), dtype=jnp.float32)
    target = jax.random.bernoulli(k2, p=0.3, shape=(B, C, H, W)).astype(jnp.float32)

    loss = jax.block_until_ready(dice_ce_loss(predicted, target))
    ref = jax.block_until_ready(dice_ce_loss_ref(predicted, target))

    assert jnp.allclose(loss, ref, rtol=1e-4, atol=1e-4), (loss, ref)
    print("KERNEL_OK")
</pallas_src>

<mosaic_0001>
module attributes {stable_mosaic.version = 11 : i64} {
  func.func @_dice_ce_kernel(%arg0: i32, %arg1: i32, %arg2: memref<1x4x2x128xf32, #tpu.memory_space<vmem>>, %arg3: memref<1x4x2x128xbf16, #tpu.memory_space<vmem>>, %arg4: memref<1x1x128xf32, #tpu.memory_space<vmem>>, %arg5: memref<1x1x128xf32, #tpu.memory_space<vmem>>, %arg6: memref<4x2x128xf32, #tpu.memory_space<vmem>>, %arg7: memref<4x2x128xf32, #tpu.memory_space<vmem>>, %arg8: memref<4x2x128xf32, #tpu.memory_space<vmem>>, %arg9: memref<2x128xf32, #tpu.memory_space<vmem>>) attributes {dimension_semantics = [#tpu.dimension_semantics<parallel>, #tpu.dimension_semantics<arbitrary>], iteration_bounds = array<i64: 2, 1>, scalar_prefetch = 0 : i64, scratch_operands = 4 : i64, tpu.core_type = #tpu.core_type<tc>, window_params = [{transform_indices = @transform_0, window_bounds = array<i64: 1, 4, 2, 128>}, {transform_indices = @transform_1, window_bounds = array<i64: 1, 4, 2, 128>}, {transform_indices = @transform_2, window_bounds = array<i64: 1, 1, 128>}, {transform_indices = @transform_3, window_bounds = array<i64: 1, 1, 128>}]} {
    %c0_i32 = arith.constant 0 : i32
    %0 = arith.cmpi eq, %arg1, %c0_i32 : i32
    %1 = arith.extui %0 : i1 to i32
    %c0_i32_0 = arith.constant 0 : i32
    %2 = arith.cmpi ne, %1, %c0_i32_0 : i32
    scf.if %2 {
      %cst_118 = arith.constant 0.000000e+00 : f32
      %160 = vector.broadcast %cst_118 : f32 to vector<4x2x128xf32>
      %c0_119 = arith.constant 0 : index
      %c0_120 = arith.constant 0 : index
      %c0_121 = arith.constant 0 : index
      %161 = vector.load %arg6[%c0_119, %c0_120, %c0_121] : memref<4x2x128xf32, #tpu.memory_space<vmem>>, vector<4x2x128xf32>
      tpu.vector_store %arg6[%c0_119, %c0_120, %c0_121], %160 {strides = array<i32>} : memref<4x2x128xf32, #tpu.memory_space<vmem>>, vector<4x2x128xf32>,
      %cst_122 = arith.constant 0.000000e+00 : f32
      %162 = vector.broadcast %cst_122 : f32 to vector<4x2x128xf32>
      %c0_123 = arith.constant 0 : index
      %c0_124 = arith.constant 0 : index
      %c0_125 = arith.constant 0 : index
      %163 = vector.load %arg7[%c0_123, %c0_124, %c0_125] : memref<4x2x128xf32, #tpu.memory_space<vmem>>, vector<4x2x128xf32>
      tpu.vector_store %arg7[%c0_123, %c0_124, %c0_125], %162 {strides = array<i32>} : memref<4x2x128xf32, #tpu.memory_space<vmem>>, vector<4x2x128xf32>,
      %cst_126 = arith.constant 0.000000e+00 : f32
      %164 = vector.broadcast %cst_126 : f32 to vector<4x2x128xf32>
      %c0_127 = arith.constant 0 : index
      %c0_128 = arith.constant 0 : index
      %c0_129 = arith.constant 0 : index
      %165 = vector.load %arg8[%c0_127, %c0_128, %c0_129] : memref<4x2x128xf32, #tpu.memory_space<vmem>>, vector<4x2x128xf32>
      tpu.vector_store %arg8[%c0_127, %c0_128, %c0_129], %164 {strides = array<i32>} : memref<4x2x128xf32, #tpu.memory_space<vmem>>, vector<4x2x128xf32>,
      %cst_130 = arith.constant 0.000000e+00 : f32
      %166 = vector.broadcast %cst_130 : f32 to vector<2x128xf32>
      %c0_131 = arith.constant 0 : index
      %c0_132 = arith.constant 0 : index
      %167 = vector.load %arg9[%c0_131, %c0_132] : memref<2x128xf32, #tpu.memory_space<vmem>>, vector<2x128xf32>
      tpu.vector_store %arg9[%c0_131, %c0_132], %166 {strides = array<i32>} : memref<2x128xf32, #tpu.memory_space<vmem>>, vector<2x128xf32>,
    } else {
    }
    %c0 = arith.constant 0 : index
    %c0_1 = arith.constant 0 : index
    %c0_2 = arith.constant 0 : index
    %c0_3 = arith.constant 0 : index
    %3 = vector.load %arg2[%c0, %c0_1, %c0_2, %c0_3] : memref<1x4x2x128xf32, #tpu.memory_space<vmem>>, vector<1x1x2x128xf32>
    %4 = vector.shape_cast %3 : vector<1x1x2x128xf32> to vector<2x128xf32>
    %c0_4 = arith.constant 0 : index
    %c1 = arith.constant 1 : index
    %c0_5 = arith.constant 0 : index
    %c0_6 = arith.constant 0 : index
    %5 = vector.load %arg2[%c0_4, %c1, %c0_5, %c0_6] : memref<1x4x2x128xf32, #tpu.memory_space<vmem>>, vector<1x1x2x128xf32>
    %6 = vector.shape_cast %5 : vector<1x1x2x128xf32> to vector<2x128xf32>
    %c0_7 = arith.constant 0 : index
    %c2 = arith.constant 2 : index
    %c0_8 = arith.constant 0 : index
    %c0_9 = arith.constant 0 : index
    %7 = vector.load %arg2[%c0_7, %c2, %c0_8, %c0_9] : memref<1x4x2x128xf32, #tpu.memory_space<vmem>>, vector<1x1x2x128xf32>
    %8 = vector.shape_cast %7 : vector<1x1x2x128xf32> to vector<2x128xf32>
    %c0_10 = arith.constant 0 : index
    %c3 = arith.constant 3 : index
    %c0_11 = arith.constant 0 : index
    %c0_12 = arith.constant 0 : index
    %9 = vector.load %arg2[%c0_10, %c3, %c0_11, %c0_12] : memref<1x4x2x128xf32, #tpu.memory_space<vmem>>, vector<1x1x2x128xf32>
    %10 = vector.shape_cast %9 : vector<1x1x2x128xf32> to vector<2x128xf32>
    %c0_13 = arith.constant 0 : index
    %c0_14 = arith.constant 0 : index
    %c0_15 = arith.constant 0 : index
    %c0_16 = arith.constant 0 : index
    %11 = vector.load %arg3[%c0_13, %c0_14, %c0_15, %c0_16] : memref<1x4x2x128xbf16, #tpu.memory_space<vmem>>, vector<1x1x2x128xbf16>
    %12 = vector.shape_cast %11 : vector<1x1x2x128xbf16> to vector<2x128xbf16>
    %13 = arith.extf %12 : vector<2x128xbf16> to vector<2x128xf32>
    %c0_17 = arith.constant 0 : index
    %c1_18 = arith.constant 1 : index
    %c0_19 = arith.constant 0 : index
    %c0_20 = arith.constant 0 : index
    %14 = vector.load %arg3[%c0_17, %c1_18, %c0_19, %c0_20] : memref<1x4x2x128xbf16, #tpu.memory_space<vmem>>, vector<1x1x2x128xbf16>
    %15 = vector.shape_cast %14 : vector<1x1x2x128xbf16> to vector<2x128xbf16>
    %16 = arith.extf %15 : vector<2x128xbf16> to vector<2x128xf32>
    %c0_21 = arith.constant 0 : index
    %c2_22 = arith.constant 2 : index
    %c0_23 = arith.constant 0 : index
    %c0_24 = arith.constant 0 : index
    %17 = vector.load %arg3[%c0_21, %c2_22, %c0_23, %c0_24] : memref<1x4x2x128xbf16, #tpu.memory_space<vmem>>, vector<1x1x2x128xbf16>
    %18 = vector.shape_cast %17 : vector<1x1x2x128xbf16> to vector<2x128xbf16>
    %19 = arith.extf %18 : vector<2x128xbf16> to vector<2x128xf32>
    %c0_25 = arith.constant 0 : index
    %c3_26 = arith.constant 3 : index
    %c0_27 = arith.constant 0 : index
    %c0_28 = arith.constant 0 : index
    %20 = vector.load %arg3[%c0_25, %c3_26, %c0_27, %c0_28] : memref<1x4x2x128xbf16, #tpu.memory_space<vmem>>, vector<1x1x2x128xbf16>
    %21 = vector.shape_cast %20 : vector<1x1x2x128xbf16> to vector<2x128xbf16>
    %22 = arith.extf %21 : vector<2x128xbf16> to vector<2x128xf32>
    %cst = arith.constant 5.000000e-01 : f32
    %23 = vector.broadcast %cst : f32 to vector<2x128xf32>
    %24 = arith.mulf %23, %4 : vector<2x128xf32>
    %25 = math.tanh %24 : vector<2x128xf32>
    %cst_29 = arith.constant 1.000000e+00 : f32
    %26 = vector.broadcast %cst_29 : f32 to vector<2x128xf32>
    %27 = arith.addf %26, %25 : vector<2x128xf32>
    %cst_30 = arith.constant 5.000000e-01 : f32
    %28 = vector.broadcast %cst_30 : f32 to vector<2x128xf32>
    %29 = arith.mulf %28, %27 : vector<2x128xf32>
    %c0_31 = arith.constant 0 : index
    %c0_32 = arith.constant 0 : index
    %c0_33 = arith.constant 0 : index
    %30 = vector.load %arg6[%c0_31, %c0_32, %c0_33] : memref<4x2x128xf32, #tpu.memory_space<vmem>>, vector<1x2x128xf32>
    %31 = vector.shape_cast %30 : vector<1x2x128xf32> to vector<2x128xf32>
    %32 = arith.mulf %29, %13 : vector<2x128xf32>
    %33 = arith.addf %31, %32 : vector<2x128xf32>
    %c0_34 = arith.constant 0 : index
    %c0_35 = arith.constant 0 : index
    %c0_36 = arith.constant 0 : index
    %34 = vector.load %arg6[%c0_34, %c0_35, %c0_36] : memref<4x2x128xf32, #tpu.memory_space<vmem>>, vector<1x2x128xf32>
    %35 = vector.shape_cast %34 : vector<1x2x128xf32> to vector<2x128xf32>
    %36 = vector.shape_cast %33 : vector<2x128xf32> to vector<1x2x128xf32>
    tpu.vector_store %arg6[%c0_34, %c0_35, %c0_36], %36 {strides = array<i32>} : memref<4x2x128xf32, #tpu.memory_space<vmem>>, vector<1x2x128xf32>,
    %c0_37 = arith.constant 0 : index
    %c0_38 = arith.constant 0 : index
    %c0_39 = arith.constant 0 : index
    %37 = vector.load %arg7[%c0_37, %c0_38, %c0_39] : memref<4x2x128xf32, #tpu.memory_space<vmem>>, vector<1x2x128xf32>
    %38 = vector.shape_cast %37 : vector<1x2x128xf32> to vector<2x128xf32>
    %39 = arith.addf %38, %29 : vector<2x128xf32>
    %c0_40 = arith.constant 0 : index
    %c0_41 = arith.constant 0 : index
    %c0_42 = arith.constant 0 : index
    %40 = vector.load %arg7[%c0_40, %c0_41, %c0_42] : memref<4x2x128xf32, #tpu.memory_space<vmem>>, vector<1x2x128xf32>
    %41 = vector.shape_cast %40 : vector<1x2x128xf32> to vector<2x128xf32>
    %42 = vector.shape_cast %39 : vector<2x128xf32> to vector<1x2x128xf32>
    tpu.vector_store %arg7[%c0_40, %c0_41, %c0_42], %42 {strides = array<i32>} : memref<4x2x128xf32, #tpu.memory_space<vmem>>, vector<1x2x128xf32>,
    %c0_43 = arith.constant 0 : index
    %c0_44 = arith.constant 0 : index
    %c0_45 = arith.constant 0 : index
    %43 = vector.load %arg8[%c0_43, %c0_44, %c0_45] : memref<4x2x128xf32, #tpu.memory_space<vmem>>, vector<1x2x128xf32>
    %44 = vector.shape_cast %43 : vector<1x2x128xf32> to vector<2x128xf32>
    %45 = arith.addf %44, %13 : vector<2x128xf32>
    %c0_46 = arith.constant 0 : index
    %c0_47 = arith.constant 0 : index
    %c0_48 = arith.constant 0 : index
    %46 = vector.load %arg8[%c0_46, %c0_47, %c0_48] : memref<4x2x128xf32, #tpu.memory_space<vmem>>, vector<1x2x128xf32>
    %47 = vector.shape_cast %46 : vector<1x2x128xf32> to vector<2x128xf32>
    %48 = vector.shape_cast %45 : vector<2x128xf32> to vector<1x2x128xf32>
    tpu.vector_store %arg8[%c0_46, %c0_47, %c0_48], %48 {strides = array<i32>} : memref<4x2x128xf32, #tpu.memory_space<vmem>>, vector<1x2x128xf32>,
    %cst_49 = arith.constant 5.000000e-01 : f32
    %49 = vector.broadcast %cst_49 : f32 to vector<2x128xf32>
    %50 = arith.mulf %49, %6 : vector<2x128xf32>
    %51 = math.tanh %50 : vector<2x128xf32>
    %cst_50 = arith.constant 1.000000e+00 : f32
    %52 = vector.broadcast %cst_50 : f32 to vector<2x128xf32>
    %53 = arith.addf %52, %51 : vector<2x128xf32>
    %cst_51 = arith.constant 5.000000e-01 : f32
    %54 = vector.broadcast %cst_51 : f32 to vector<2x128xf32>
    %55 = arith.mulf %54, %53 : vector<2x128xf32>
    %c1_52 = arith.constant 1 : index
    %c0_53 = arith.constant 0 : index
    %c0_54 = arith.constant 0 : index
    %56 = vector.load %arg6[%c1_52, %c0_53, %c0_54] : memref<4x2x128xf32, #tpu.memory_space<vmem>>, vector<1x2x128xf32>
    %57 = vector.shape_cast %56 : vector<1x2x128xf32> to vector<2x128xf32>
    %58 = arith.mulf %55, %16 : vector<2x128xf32>
    %59 = arith.addf %57, %58 : vector<2x128xf32>
    %c1_55 = arith.constant 1 : index
    %c0_56 = arith.constant 0 : index
    %c0_57 = arith.constant 0 : index
    %60 = vector.load %arg6[%c1_55, %c0_56, %c0_57] : memref<4x2x128xf32, #tpu.memory_space<vmem>>, vector<1x2x128xf32>
    %61 = vector.shape_cast %60 : vector<1x2x128xf32> to vector<2x128xf32>
    %62 = vector.shape_cast %59 : vector<2x128xf32> to vector<1x2x128xf32>
    tpu.vector_store %arg6[%c1_55, %c0_56, %c0_57], %62 {strides = array<i32>} : memref<4x2x128xf32, #tpu.memory_space<vmem>>, vector<1x2x128xf32>,
    %c1_58 = arith.constant 1 : index
    %c0_59 = arith.constant 0 : index
    %c0_60 = arith.constant 0 : index
    %63 = vector.load %arg7[%c1_58, %c0_59, %c0_60] : memref<4x2x128xf32, #tpu.memory_space<vmem>>, vector<1x2x128xf32>
    %64 = vector.shape_cast %63 : vector<1x2x128xf32> to vector<2x128xf32>
    %65 = arith.addf %64, %55 : vector<2x128xf32>
    %c1_61 = arith.constant 1 : index
    %c0_62 = arith.constant 0 : index
    %c0_63 = arith.constant 0 : index
    %66 = vector.load %arg7[%c1_61, %c0_62, %c0_63] : memref<4x2x128xf32, #tpu.memory_space<vmem>>, vector<1x2x128xf32>
    %67 = vector.shape_cast %66 : vector<1x2x128xf32> to vector<2x128xf32>
    %68 = vector.shape_cast %65 : vector<2x128xf32> to vector<1x2x128xf32>
    tpu.vector_store %arg7[%c1_61, %c0_62, %c0_63], %68 {strides = array<i32>} : memref<4x2x128xf32, #tpu.memory_space<vmem>>, vector<1x2x128xf32>,
    %c1_64 = arith.constant 1 : index
    %c0_65 = arith.constant 0 : index
    %c0_66 = arith.constant 0 : index
    %69 = vector.load %arg8[%c1_64, %c0_65, %c0_66] : memref<4x2x128xf32, #tpu.memory_space<vmem>>, vector<1x2x128xf32>
    %70 = vector.shape_cast %69 : vector<1x2x128xf32> to vector<2x128xf32>
    %71 = arith.addf %70, %16 : vector<2x128xf32>
    %c1_67 = arith.constant 1 : index
    %c0_68 = arith.constant 0 : index
    %c0_69 = arith.constant 0 : index
    %72 = vector.load %arg8[%c1_67, %c0_68, %c0_69] : memref<4x2x128xf32, #tpu.memory_space<vmem>>, vector<1x2x128xf32>
    %73 = vector.shape_cast %72 : vector<1x2x128xf32> to vector<2x128xf32>
    %74 = vector.shape_cast %71 : vector<2x128xf32> to vector<1x2x128xf32>
    tpu.vector_store %arg8[%c1_67, %c0_68, %c0_69], %74 {strides = array<i32>} : memref<4x2x128xf32, #tpu.memory_space<vmem>>, vector<1x2x128xf32>,
    %cst_70 = arith.constant 5.000000e-01 : f32
    %75 = vector.broadcast %cst_70 : f32 to vector<2x128xf32>
    %76 = arith.mulf %75, %8 : vector<2x128xf32>
    %77 = math.tanh %76 : vector<2x128xf32>
    %cst_71 = arith.constant 1.000000e+00 : f32
    %78 = vector.broadcast %cst_71 : f32 to vector<2x128xf32>
    %79 = arith.addf %78, %77 : vector<2x128xf32>
    %cst_72 = arith.constant 5.000000e-01 : f32
    %80 = vector.broadcast %cst_72 : f32 to vector<2x128xf32>
    %81 = arith.mulf %80, %79 : vector<2x128xf32>
    %c2_73 = arith.constant 2 : index
    %c0_74 = arith.constant 0 : index
    %c0_75 = arith.constant 0 : index
    %82 = vector.load %arg6[%c2_73, %c0_74, %c0_75] : memref<4x2x128xf32, #tpu.memory_space<vmem>>, vector<1x2x128xf32>
    %83 = vector.shape_cast %82 : vector<1x2x128xf32> to vector<2x128xf32>
    %84 = arith.mulf %81, %19 : vector<2x128xf32>
    %85 = arith.addf %83, %84 : vector<2x128xf32>
    %c2_76 = arith.constant 2 : index
    %c0_77 = arith.constant 0 : index
    %c0_78 = arith.constant 0 : index
    %86 = vector.load %arg6[%c2_76, %c0_77, %c0_78] : memref<4x2x128xf32, #tpu.memory_space<vmem>>, vector<1x2x128xf32>
    %87 = vector.shape_cast %86 : vector<1x2x128xf32> to vector<2x128xf32>
    %88 = vector.shape_cast %85 : vector<2x128xf32> to vector<1x2x128xf32>
    tpu.vector_store %arg6[%c2_76, %c0_77, %c0_78], %88 {strides = array<i32>} : memref<4x2x128xf32, #tpu.memory_space<vmem>>, vector<1x2x128xf32>,
    %c2_79 = arith.constant 2 : index
    %c0_80 = arith.constant 0 : index
    %c0_81 = arith.constant 0 : index
    %89 = vector.load %arg7[%c2_79, %c0_80, %c0_81] : memref<4x2x128xf32, #tpu.memory_space<vmem>>, vector<1x2x128xf32>
    %90 = vector.shape_cast %89 : vector<1x2x128xf32> to vector<2x128xf32>
    %91 = arith.addf %90, %81 : vector<2x128xf32>
    %c2_82 = arith.constant 2 : index
    %c0_83 = arith.constant 0 : index
    %c0_84 = arith.constant 0 : index
    %92 = vector.load %arg7[%c2_82, %c0_83, %c0_84] : memref<4x2x128xf32, #tpu.memory_space<vmem>>, vector<1x2x128xf32>
    %93 = vector.shape_cast %92 : vector<1x2x128xf32> to vector<2x128xf32>
    %94 = vector.shape_cast %91 : vector<2x128xf32> to vector<1x2x128xf32>
    tpu.vector_store %arg7[%c2_82, %c0_83, %c0_84], %94 {strides = array<i32>} : memref<4x2x128xf32, #tpu.memory_space<vmem>>, vector<1x2x128xf32>,
    %c2_85 = arith.constant 2 : index
    %c0_86 = arith.constant 0 : index
    %c0_87 = arith.constant 0 : index
    %95 = vector.load %arg8[%c2_85, %c0_86, %c0_87] : memref<4x2x128xf32, #tpu.memory_space<vmem>>, vector<1x2x128xf32>
    %96 = vector.shape_cast %95 : vector<1x2x128xf32> to vector<2x128xf32>
    %97 = arith.addf %96, %19 : vector<2x128xf32>
    %c2_88 = arith.constant 2 : index
    %c0_89 = arith.constant 0 : index
    %c0_90 = arith.constant 0 : index
    %98 = vector.load %arg8[%c2_88, %c0_89, %c0_90] : memref<4x2x128xf32, #tpu.memory_space<vmem>>, vector<1x2x128xf32>
    %99 = vector.shape_cast %98 : vector<1x2x128xf32> to vector<2x128xf32>
    %100 = vector.shape_cast %97 : vector<2x128xf32> to vector<1x2x128xf32>
    tpu.vector_store %arg8[%c2_88, %c0_89, %c0_90], %100 {strides = array<i32>} : memref<4x2x128xf32, #tpu.memory_space<vmem>>, vector<1x2x128xf32>,
    %cst_91 = arith.constant 5.000000e-01 : f32
    %101 = vector.broadcast %cst_91 : f32 to vector<2x128xf32>
    %102 = arith.mulf %101, %10 : vector<2x128xf32>
    %103 = math.tanh %102 : vector<2x128xf32>
    %cst_92 = arith.constant 1.000000e+00 : f32
    %104 = vector.broadcast %cst_92 : f32 to vector<2x128xf32>
    %105 = arith.addf %104, %103 : vector<2x128xf32>
    %cst_93 = arith.constant 5.000000e-01 : f32
    %106 = vector.broadcast %cst_93 : f32 to vector<2x128xf32>
    %107 = arith.mulf %106, %105 : vector<2x128xf32>
    %c3_94 = arith.constant 3 : index
    %c0_95 = arith.constant 0 : index
    %c0_96 = arith.constant 0 : index
    %108 = vector.load %arg6[%c3_94, %c0_95, %c0_96] : memref<4x2x128xf32, #tpu.memory_space<vmem>>, vector<1x2x128xf32>
    %109 = vector.shape_cast %108 : vector<1x2x128xf32> to vector<2x128xf32>
    %110 = arith.mulf %107, %22 : vector<2x128xf32>
    %111 = arith.addf %109, %110 : vector<2x128xf32>
    %c3_97 = arith.constant 3 : index
    %c0_98 = arith.constant 0 : index
    %c0_99 = arith.constant 0 : index
    %112 = vector.load %arg6[%c3_97, %c0_98, %c0_99] : memref<4x2x128xf32, #tpu.memory_space<vmem>>, vector<1x2x128xf32>
    %113 = vector.shape_cast %112 : vector<1x2x128xf32> to vector<2x128xf32>
    %114 = vector.shape_cast %111 : vector<2x128xf32> to vector<1x2x128xf32>
    tpu.vector_store %arg6[%c3_97, %c0_98, %c0_99], %114 {strides = array<i32>} : memref<4x2x128xf32, #tpu.memory_space<vmem>>, vector<1x2x128xf32>,
    %c3_100 = arith.constant 3 : index
    %c0_101 = arith.constant 0 : index
    %c0_102 = arith.constant 0 : index
    %115 = vector.load %arg7[%c3_100, %c0_101, %c0_102] : memref<4x2x128xf32, #tpu.memory_space<vmem>>, vector<1x2x128xf32>
    %116 = vector.shape_cast %115 : vector<1x2x128xf32> to vector<2x128xf32>
    %117 = arith.addf %116, %107 : vector<2x128xf32>
    %c3_103 = arith.constant 3 : index
    %c0_104 = arith.constant 0 : index
    %c0_105 = arith.constant 0 : index
    %118 = vector.load %arg7[%c3_103, %c0_104, %c0_105] : memref<4x2x128xf32, #tpu.memory_space<vmem>>, vector<1x2x128xf32>
    %119 = vector.shape_cast %118 : vector<1x2x128xf32> to vector<2x128xf32>
    %120 = vector.shape_cast %117 : vector<2x128xf32> to vector<1x2x128xf32>
    tpu.vector_store %arg7[%c3_103, %c0_104, %c0_105], %120 {strides = array<i32>} : memref<4x2x128xf32, #tpu.memory_space<vmem>>, vector<1x2x128xf32>,
    %c3_106 = arith.constant 3 : index
    %c0_107 = arith.constant 0 : index
    %c0_108 = arith.constant 0 : index
    %121 = vector.load %arg8[%c3_106, %c0_107, %c0_108] : memref<4x2x128xf32, #tpu.memory_space<vmem>>, vector<1x2x128xf32>
    %122 = vector.shape_cast %121 : vector<1x2x128xf32> to vector<2x128xf32>
    %123 = arith.addf %122, %22 : vector<2x128xf32>
    %c3_109 = arith.constant 3 : index
    %c0_110 = arith.constant 0 : index
    %c0_111 = arith.constant 0 : index
    %124 = vector.load %arg8[%c3_109, %c0_110, %c0_111] : memref<4x2x128xf32, #tpu.memory_space<vmem>>, vector<1x2x128xf32>
    %125 = vector.shape_cast %124 : vector<1x2x128xf32> to vector<2x128xf32>
    %126 = vector.shape_cast %123 : vector<2x128xf32> to vector<1x2x128xf32>
    tpu.vector_store %arg8[%c3_109, %c0_110, %c0_111], %126 {strides = array<i32>} : memref<4x2x128xf32, #tpu.memory_space<vmem>>, vector<1x2x128xf32>,
    %127 = arith.maximumf %4, %6 : vector<2x128xf32>
    %128 = arith.maximumf %127, %8 : vector<2x128xf32>
    %129 = arith.maximumf %128, %10 : vector<2x128xf32>
    %130 = arith.subf %4, %129 : vector<2x128xf32>
    %131 = math.exp %130 : vector<2x128xf32>
    %132 = arith.subf %6, %129 : vector<2x128xf32>
    %133 = math.exp %132 : vector<2x128xf32>
    %134 = arith.addf %131, %133 : vector<2x128xf32>
    %135 = arith.subf %8, %129 : vector<2x128xf32>
    %136 = math.exp %135 : vector<2x128xf32>
    %137 = arith.addf %134, %136 : vector<2x128xf32>
    %138 = arith.subf %10, %129 : vector<2x128xf32>
    %139 = math.exp %138 : vector<2x128xf32>
    %140 = arith.addf %137, %139 : vector<2x128xf32>
    %141 = math.log %140 : vector<2x128xf32>
    %142 = arith.addf %129, %141 : vector<2x128xf32>
    %143 = arith.subf %142, %4 : vector<2x128xf32>
    %144 = arith.mulf %13, %143 : vector<2x128xf32>
    %145 = arith.subf %142, %6 : vector<2x128xf32>
    %146 = arith.mulf %16, %145 : vector<2x128xf32>
    %147 = arith.addf %144, %146 : vector<2x128xf32>
    %148 = arith.subf %142, %8 : vector<2x128xf32>
    %149 = arith.mulf %19, %148 : vector<2x128xf32>
    %150 = arith.addf %147, %149 : vector<2x128xf32>
    %151 = arith.subf %142, %10 : vector<2x128xf32>
    %152 = arith.mulf %22, %151 : vector<2x128xf32>
    %153 = arith.addf %150, %152 : vector<2x128xf32>
    %c0_112 = arith.constant 0 : index
    %c0_113 = arith.constant 0 : index
    %154 = vector.load %arg9[%c0_112, %c0_113] : memref<2x128xf32, #tpu.memory_space<vmem>>, vector<2x128xf32>
    %155 = arith.addf %154, %153 : vector<2x128xf32>
    %c0_114 = arith.constant 0 : index
    %c0_115 = arith.constant 0 : index
    %156 = vector.load %arg9[%c0_114, %c0_115] : memref<2x128xf32, #tpu.memory_space<vmem>>, vector<2x128xf32>
    tpu.vector_store %arg9[%c0_114, %c0_115], %155 {strides = array<i32>} : memref<2x128xf32, #tpu.memory_space<vmem>>, vector<2x128xf32>,
    %c0_i32_116 = arith.constant 0 : i32
    %157 = arith.cmpi eq, %arg1, %c0_i32_116 : i32
    %158 = arith.extui %157 : i1 to i32
    %c0_i32_117 = arith.constant 0 : i32
    %159 = arith.cmpi ne, %158, %c0_i32_117 : i32
    scf.if %159 {
      %c0_118 = arith.constant 0 : index
      %c0_119 = arith.constant 0 : index
      %c0_120 = arith.constant 0 : index
      %160 = vector.load %arg6[%c0_118, %c0_119, %c0_120] : memref<4x2x128xf32, #tpu.memory_space<vmem>>, vector<1x2x128xf32>
      %161 = vector.shape_cast %160 : vector<1x2x128xf32> to vector<2x128xf32>
      %162 = vector.shape_cast %161 : vector<2x128xf32> to vector<1x2x128xf32>
      %cst_121 = arith.constant dense<0.000000e+00> : vector<1xf32>
      %163 = vector.multi_reduction <add>, %162, %cst_121 [1, 2] : vector<1x2x128xf32> to vector<1xf32>
      %164 = vector.shape_cast %163 : vector<1xf32> to vector<1x1x1xf32>
      %165 = vector.extract %164[0, 0, 0] : f32 from vector<1x1x1xf32>
      %166 = vector.broadcast %165 : f32 to vector<1x1xf32>
      %c0_122 = arith.constant 0 : index
      %c0_123 = arith.constant 0 : index
      %c0_124 = arith.constant 0 : index
      %167 = vector.load %arg7[%c0_122, %c0_123, %c0_124] : memref<4x2x128xf32, #tpu.memory_space<vmem>>, vector<1x2x128xf32>
      %168 = vector.shape_cast %167 : vector<1x2x128xf32> to vector<2x128xf32>
      %169 = vector.shape_cast %168 : vector<2x128xf32> to vector<1x2x128xf32>
      %cst_125 = arith.constant dense<0.000000e+00> : vector<1xf32>
      %170 = vector.multi_reduction <add>, %169, %cst_125 [1, 2] : vector<1x2x128xf32> to vector<1xf32>
      %171 = vector.shape_cast %170 : vector<1xf32> to vector<1x1x1xf32>
      %172 = vector.extract %171[0, 0, 0] : f32 from vector<1x1x1xf32>
      %173 = vector.broadcast %172 : f32 to vector<1x1xf32>
      %c0_126 = arith.constant 0 : index
      %c0_127 = arith.constant 0 : index
      %c0_128 = arith.constant 0 : index
      %174 = vector.load %arg8[%c0_126, %c0_127, %c0_128] : memref<4x2x128xf32, #tpu.memory_space<vmem>>, vector<1x2x128xf32>
      %175 = vector.shape_cast %174 : vector<1x2x128xf32> to vector<2x128xf32>
      %176 = vector.shape_cast %175 : vector<2x128xf32> to vector<1x2x128xf32>
      %cst_129 = arith.constant dense<0.000000e+00> : vector<1xf32>
      %177 = vector.multi_reduction <add>, %176, %cst_129 [1, 2] : vector<1x2x128xf32> to vector<1xf32>
      %178 = vector.shape_cast %177 : vector<1xf32> to vector<1x1x1xf32>
      %179 = vector.extract %178[0, 0, 0] : f32 from vector<1x1x1xf32>
      %180 = vector.broadcast %179 : f32 to vector<1x1xf32>
      %cst_130 = arith.constant 2.000000e+00 : f32
      %181 = vector.broadcast %cst_130 : f32 to vector<1x1xf32>
      %182 = arith.mulf %181, %166 : vector<1x1xf32>
      %cst_131 = arith.constant 9.99999974E-6 : f32
      %183 = vector.broadcast %cst_131 : f32 to vector<1x1xf32>
      %184 = arith.addf %182, %183 : vector<1x1xf32>
      %185 = arith.addf %173, %180 : vector<1x1xf32>
      %cst_132 = arith.constant 9.99999974E-6 : f32
      %186 = vector.broadcast %cst_132 : f32 to vector<1x1xf32>
      %187 = arith.addf %185, %186 : vector<1x1xf32>
      %188 = arith.divf %184, %187 : vector<1x1xf32>
      %cst_133 = arith.constant 1.000000e+00 : f32
      %189 = vector.broadcast %cst_133 : f32 to vector<1x1xf32>
      %190 = arith.subf %189, %188 : vector<1x1xf32>
      %c1_134 = arith.constant 1 : index
      %c0_135 = arith.constant 0 : index
      %c0_136 = arith.constant 0 : index
      %191 = vector.load %arg6[%c1_134, %c0_135, %c0_136] : memref<4x2x128xf32, #tpu.memory_space<vmem>>, vector<1x2x128xf32>
      %192 = vector.shape_cast %191 : vector<1x2x128xf32> to vector<2x128xf32>
      %193 = vector.shape_cast %192 : vector<2x128xf32> to vector<1x2x128xf32>
      %cst_137 = arith.constant dense<0.000000e+00> : vector<1xf32>
      %194 = vector.multi_reduction <add>, %193, %cst_137 [1, 2] : vector<1x2x128xf32> to vector<1xf32>
      %195 = vector.shape_cast %194 : vector<1xf32> to vector<1x1x1xf32>
      %196 = vector.extract %195[0, 0, 0] : f32 from vector<1x1x1xf32>
      %197 = vector.broadcast %196 : f32 to vector<1x1xf32>
      %c1_138 = arith.constant 1 : index
      %c0_139 = arith.constant 0 : index
      %c0_140 = arith.constant 0 : index
      %198 = vector.load %arg7[%c1_138, %c0_139, %c0_140] : memref<4x2x128xf32, #tpu.memory_space<vmem>>, vector<1x2x128xf32>
      %199 = vector.shape_cast %198 : vector<1x2x128xf32> to vector<2x128xf32>
      %200 = vector.shape_cast %199 : vector<2x128xf32> to vector<1x2x128xf32>
      %cst_141 = arith.constant dense<0.000000e+00> : vector<1xf32>
      %201 = vector.multi_reduction <add>, %200, %cst_141 [1, 2] : vector<1x2x128xf32> to vector<1xf32>
      %202 = vector.shape_cast %201 : vector<1xf32> to vector<1x1x1xf32>
      %203 = vector.extract %202[0, 0, 0] : f32 from vector<1x1x1xf32>
      %204 = vector.broadcast %203 : f32 to vector<1x1xf32>
      %c1_142 = arith.constant 1 : index
      %c0_143 = arith.constant 0 : index
      %c0_144 = arith.constant 0 : index
      %205 = vector.load %arg8[%c1_142, %c0_143, %c0_144] : memref<4x2x128xf32, #tpu.memory_space<vmem>>, vector<1x2x128xf32>
      %206 = vector.shape_cast %205 : vector<1x2x128xf32> to vector<2x128xf32>
      %207 = vector.shape_cast %206 : vector<2x128xf32> to vector<1x2x128xf32>
      %cst_145 = arith.constant dense<0.000000e+00> : vector<1xf32>
      %208 = vector.multi_reduction <add>, %207, %cst_145 [1, 2] : vector<1x2x128xf32> to vector<1xf32>
      %209 = vector.shape_cast %208 : vector<1xf32> to vector<1x1x1xf32>
      %210 = vector.extract %209[0, 0, 0] : f32 from vector<1x1x1xf32>
      %211 = vector.broadcast %210 : f32 to vector<1x1xf32>
      %cst_146 = arith.constant 2.000000e+00 : f32
      %212 = vector.broadcast %cst_146 : f32 to vector<1x1xf32>
      %213 = arith.mulf %212, %197 : vector<1x1xf32>
      %cst_147 = arith.constant 9.99999974E-6 : f32
      %214 = vector.broadcast %cst_147 : f32 to vector<1x1xf32>
      %215 = arith.addf %213, %214 : vector<1x1xf32>
      %216 = arith.addf %204, %211 : vector<1x1xf32>
      %cst_148 = arith.constant 9.99999974E-6 : f32
      %217 = vector.broadcast %cst_148 : f32 to vector<1x1xf32>
      %218 = arith.addf %216, %217 : vector<1x1xf32>
      %219 = arith.divf %215, %218 : vector<1x1xf32>
      %cst_149 = arith.constant 1.000000e+00 : f32
      %220 = vector.broadcast %cst_149 : f32 to vector<1x1xf32>
      %221 = arith.subf %220, %219 : vector<1x1xf32>
      %222 = arith.addf %190, %221 : vector<1x1xf32>
      %c2_150 = arith.constant 2 : index
      %c0_151 = arith.constant 0 : index
      %c0_152 = arith.constant 0 : index
      %223 = vector.load %arg6[%c2_150, %c0_151, %c0_152] : memref<4x2x128xf32, #tpu.memory_space<vmem>>, vector<1x2x128xf32>
      %224 = vector.shape_cast %223 : vector<1x2x128xf32> to vector<2x128xf32>
      %225 = vector.shape_cast %224 : vector<2x128xf32> to vector<1x2x128xf32>
      %cst_153 = arith.constant dense<0.000000e+00> : vector<1xf32>
      %226 = vector.multi_reduction <add>, %225, %cst_153 [1, 2] : vector<1x2x128xf32> to vector<1xf32>
      %227 = vector.shape_cast %226 : vector<1xf32> to vector<1x1x1xf32>
      %228 = vector.extract %227[0, 0, 0] : f32 from vector<1x1x1xf32>
      %229 = vector.broadcast %228 : f32 to vector<1x1xf32>
      %c2_154 = arith.constant 2 : index
      %c0_155 = arith.constant 0 : index
      %c0_156 = arith.constant 0 : index
      %230 = vector.load %arg7[%c2_154, %c0_155, %c0_156] : memref<4x2x128xf32, #tpu.memory_space<vmem>>, vector<1x2x128xf32>
      %231 = vector.shape_cast %230 : vector<1x2x128xf32> to vector<2x128xf32>
      %232 = vector.shape_cast %231 : vector<2x128xf32> to vector<1x2x128xf32>
      %cst_157 = arith.constant dense<0.000000e+00> : vector<1xf32>
      %233 = vector.multi_reduction <add>, %232, %cst_157 [1, 2] : vector<1x2x128xf32> to vector<1xf32>
      %234 = vector.shape_cast %233 : vector<1xf32> to vector<1x1x1xf32>
      %235 = vector.extract %234[0, 0, 0] : f32 from vector<1x1x1xf32>
      %236 = vector.broadcast %235 : f32 to vector<1x1xf32>
      %c2_158 = arith.constant 2 : index
      %c0_159 = arith.constant 0 : index
      %c0_160 = arith.constant 0 : index
      %237 = vector.load %arg8[%c2_158, %c0_159, %c0_160] : memref<4x2x128xf32, #tpu.memory_space<vmem>>, vector<1x2x128xf32>
      %238 = vector.shape_cast %237 : vector<1x2x128xf32> to vector<2x128xf32>
      %239 = vector.shape_cast %238 : vector<2x128xf32> to vector<1x2x128xf32>
      %cst_161 = arith.constant dense<0.000000e+00> : vector<1xf32>
      %240 = vector.multi_reduction <add>, %239, %cst_161 [1, 2] : vector<1x2x128xf32> to vector<1xf32>
      %241 = vector.shape_cast %240 : vector<1xf32> to vector<1x1x1xf32>
      %242 = vector.extract %241[0, 0, 0] : f32 from vector<1x1x1xf32>
      %243 = vector.broadcast %242 : f32 to vector<1x1xf32>
      %cst_162 = arith.constant 2.000000e+00 : f32
      %244 = vector.broadcast %cst_162 : f32 to vector<1x1xf32>
      %245 = arith.mulf %244, %229 : vector<1x1xf32>
      %cst_163 = arith.constant 9.99999974E-6 : f32
      %246 = vector.broadcast %cst_163 : f32 to vector<1x1xf32>
      %247 = arith.addf %245, %246 : vector<1x1xf32>
      %248 = arith.addf %236, %243 : vector<1x1xf32>
      %cst_164 = arith.constant 9.99999974E-6 : f32
      %249 = vector.broadcast %cst_164 : f32 to vector<1x1xf32>
      %250 = arith.addf %248, %249 : vector<1x1xf32>
      %251 = arith.divf %247, %250 : vector<1x1xf32>
      %cst_165 = arith.constant 1.000000e+00 : f32
      %252 = vector.broadcast %cst_165 : f32 to vector<1x1xf32>
      %253 = arith.subf %252, %251 : vector<1x1xf32>
      %254 = arith.addf %222, %253 : vector<1x1xf32>
      %c3_166 = arith.constant 3 : index
      %c0_167 = arith.constant 0 : index
      %c0_168 = arith.constant 0 : index
      %255 = vector.load %arg6[%c3_166, %c0_167, %c0_168] : memref<4x2x128xf32, #tpu.memory_space<vmem>>, vector<1x2x128xf32>
      %256 = vector.shape_cast %255 : vector<1x2x128xf32> to vector<2x128xf32>
      %257 = vector.shape_cast %256 : vector<2x128xf32> to vector<1x2x128xf32>
      %cst_169 = arith.constant dense<0.000000e+00> : vector<1xf32>
      %258 = vector.multi_reduction <add>, %257, %cst_169 [1, 2] : vector<1x2x128xf32> to vector<1xf32>
      %259 = vector.shape_cast %258 : vector<1xf32> to vector<1x1x1xf32>
      %260 = vector.extract %259[0, 0, 0] : f32 from vector<1x1x1xf32>
      %261 = vector.broadcast %260 : f32 to vector<1x1xf32>
      %c3_170 = arith.constant 3 : index
      %c0_171 = arith.constant 0 : index
      %c0_172 = arith.constant 0 : index
      %262 = vector.load %arg7[%c3_170, %c0_171, %c0_172] : memref<4x2x128xf32, #tpu.memory_space<vmem>>, vector<1x2x128xf32>
      %263 = vector.shape_cast %262 : vector<1x2x128xf32> to vector<2x128xf32>
      %264 = vector.shape_cast %263 : vector<2x128xf32> to vector<1x2x128xf32>
      %cst_173 = arith.constant dense<0.000000e+00> : vector<1xf32>
      %265 = vector.multi_reduction <add>, %264, %cst_173 [1, 2] : vector<1x2x128xf32> to vector<1xf32>
      %266 = vector.shape_cast %265 : vector<1xf32> to vector<1x1x1xf32>
      %267 = vector.extract %266[0, 0, 0] : f32 from vector<1x1x1xf32>
      %268 = vector.broadcast %267 : f32 to vector<1x1xf32>
      %c3_174 = arith.constant 3 : index
      %c0_175 = arith.constant 0 : index
      %c0_176 = arith.constant 0 : index
      %269 = vector.load %arg8[%c3_174, %c0_175, %c0_176] : memref<4x2x128xf32, #tpu.memory_space<vmem>>, vector<1x2x128xf32>
      %270 = vector.shape_cast %269 : vector<1x2x128xf32> to vector<2x128xf32>
      %271 = vector.shape_cast %270 : vector<2x128xf32> to vector<1x2x128xf32>
      %cst_177 = arith.constant dense<0.000000e+00> : vector<1xf32>
      %272 = vector.multi_reduction <add>, %271, %cst_177 [1, 2] : vector<1x2x128xf32> to vector<1xf32>
      %273 = vector.shape_cast %272 : vector<1xf32> to vector<1x1x1xf32>
      %274 = vector.extract %273[0, 0, 0] : f32 from vector<1x1x1xf32>
      %275 = vector.broadcast %274 : f32 to vector<1x1xf32>
      %cst_178 = arith.constant 2.000000e+00 : f32
      %276 = vector.broadcast %cst_178 : f32 to vector<1x1xf32>
      %277 = arith.mulf %276, %261 : vector<1x1xf32>
      %cst_179 = arith.constant 9.99999974E-6 : f32
      %278 = vector.broadcast %cst_179 : f32 to vector<1x1xf32>
      %279 = arith.addf %277, %278 : vector<1x1xf32>
      %280 = arith.addf %268, %275 : vector<1x1xf32>
      %cst_180 = arith.constant 9.99999974E-6 : f32
      %281 = vector.broadcast %cst_180 : f32 to vector<1x1xf32>
      %282 = arith.addf %280, %281 : vector<1x1xf32>
      %283 = arith.divf %279, %282 : vector<1x1xf32>
      %cst_181 = arith.constant 1.000000e+00 : f32
      %284 = vector.broadcast %cst_181 : f32 to vector<1x1xf32>
      %285 = arith.subf %284, %283 : vector<1x1xf32>
      %286 = arith.addf %254, %285 : vector<1x1xf32>
      %c0_182 = arith.constant 0 : index
      %c0_183 = arith.constant 0 : index
      %287 = vector.load %arg9[%c0_182, %c0_183] : memref<2x128xf32, #tpu.memory_space<vmem>>, vector<2x128xf32>
      %288 = vector.shape_cast %287 : vector<2x128xf32> to vector<1x2x128xf32>
      %cst_184 = arith.constant dense<0.000000e+00> : vector<1xf32>
      %289 = vector.multi_reduction <add>, %288, %cst_184 [1, 2] : vector<1x2x128xf32> to vector<1xf32>
      %290 = vector.shape_cast %289 : vector<1xf32> to vector<1x1x1xf32>
      %291 = vector.extract %290[0, 0, 0] : f32 from vector<1x1x1xf32>
      %292 = vector.broadcast %291 : f32 to vector<1x1xf32>
      %293 = vector.shape_cast %286 : vector<1x1xf32> to vector<1x1xf32>
      %294 = vector.broadcast %293 : vector<1x1xf32> to vector<1x128xf32>
      %c0_185 = arith.constant 0 : index
      %c0_186 = arith.constant 0 : index
      %c0_187 = arith.constant 0 : index
      %295 = vector.load %arg4[%c0_185, %c0_186, %c0_187] : memref<1x1x128xf32, #tpu.memory_space<vmem>>, vector<1x1x128xf32>
      %296 = vector.shape_cast %295 : vector<1x1x128xf32> to vector<1x128xf32>
      %297 = vector.shape_cast %294 : vector<1x128xf32> to vector<1x1x128xf32>
      tpu.vector_store %arg4[%c0_185, %c0_186, %c0_187], %297 {strides = array<i32>} : memref<1x1x128xf32, #tpu.memory_space<vmem>>, vector<1x1x128xf32>,
      %298 = vector.shape_cast %292 : vector<1x1xf32> to vector<1x1xf32>
      %299 = vector.broadcast %298 : vector<1x1xf32> to vector<1x128xf32>
      %c0_188 = arith.constant 0 : index
      %c0_189 = arith.constant 0 : index
      %c0_190 = arith.constant 0 : index
      %300 = vector.load %arg5[%c0_188, %c0_189, %c0_190] : memref<1x1x128xf32, #tpu.memory_space<vmem>>, vector<1x1x128xf32>
      %301 = vector.shape_cast %300 : vector<1x1x128xf32> to vector<1x128xf32>
      %302 = vector.shape_cast %299 : vector<1x128xf32> to vector<1x1x128xf32>
      tpu.vector_store %arg5[%c0_188, %c0_189, %c0_190], %302 {strides = array<i32>} : memref<1x1x128xf32, #tpu.memory_space<vmem>>, vector<1x1x128xf32>,
    } else {
    }
    return
  }
  func.func @transform_0(%arg0: i32, %arg1: i32) -> (i32, i32, i32, i32) {
    %c0_i32 = arith.constant 0 : i32
    %c0_i32_0 = arith.constant 0 : i32
    %c0_i32_1 = arith.constant 0 : i32
    return %arg0, %c0_i32, %arg1, %c0_i32_0 : i32, i32, i32, i32
  }
  func.func @transform_1(%arg0: i32, %arg1: i32) -> (i32, i32, i32, i32) {
    %c0_i32 = arith.constant 0 : i32
    %c0_i32_0 = arith.constant 0 : i32
    %c0_i32_1 = arith.constant 0 : i32
    return %arg0, %c0_i32, %arg1, %c0_i32_0 : i32, i32, i32, i32
  }
  func.func @transform_2(%arg0: i32, %arg1: i32) -> (i32, i32, i32) {
    %c0_i32 = arith.constant 0 : i32
    %c0_i32_0 = arith.constant 0 : i32
    %c0_i32_1 = arith.constant 0 : i32
    return %arg0, %c0_i32, %c0_i32_0 : i32, i32, i32
  }
  func.func @transform_3(%arg0: i32, %arg1: i32) -> (i32, i32, i32) {
    %c0_i32 = arith.constant 0 : i32
    %c0_i32_0 = arith.constant 0 : i32
    %c0_i32_1 = arith.constant 0 : i32
    return %arg0, %c0_i32, %c0_i32_0 : i32, i32, i32
  }
}

</mosaic_0001>

<bundles_post_ra>
// kernel: tpu_custom_call.1
= control target key start
LH: loop header
LB: loop body
LE: loop exit
PB: predicated region body
PF: predicated region fallthrough
CT: control target
= control target key end

     0   :  { %9 = vsyncpa [#allocation7], 0  ;;  %s1443_s0 = inlined_call_operand.hbm [shape: f32[2,4,2,128], index: 0, kind: input, shape index: {}]   ;;  %s1444_s1 = inlined_call_operand.hbm [shape: bf16[2,4,2,128], index: 1, kind: input, shape index: {}]   ;;  %s1445_s2 = inlined_call_operand.hbm [shape: f32[2,1,128], index: 2, kind: output, shape index: {0}]   ;;  %s1446_s3 = inlined_call_operand.hbm [shape: f32[2,1,128], index: 3, kind: output, shape index: {1}]  }
   0x1   :  { %11 = vsyncpa [#allocation7 + $0x1], 0 }
   0x2   :  { %12 = vsyncpa [#allocation10], 0 }
   0x3   :  { %14 = vsyncpa [#allocation10 + $0x1], 0 }
   0x4   :  { %15 = vsyncpa [#allocation8], 0 }
   0x5   :  { %17 = vsyncpa [#allocation8 + $0x1], 0 }
   0x6   :  { %18 = vsyncpa [#allocation13], 0 }
   0x7   :  { %20 = vsyncpa [#allocation13 + $0x1], 0  ;;  %s1106_s12 = smov 0   ;;  %s1108_s13 = smov 0  }
   0x8   :  { %s1110_s14 = smov 0   ;;  %s1112_s15 = smov 0  }
   0x9   :  { %s1114_s16 = smov 0   ;;  %s1116_s17 = smov 0  }
   0xa LB: > { %s743_s18 = sadd.s32 4294967295, %s1075_s17   ;;  %s744_s19 = sadd.s32 4294967294, %s1075_s17   ;;  %s1075_s17 = sphi %s1116_s17, %s26_s17   ;;  %s1071_s16 = sphi %s1114_s16, %s1464_s16   ;;  %s1067_s15 = sphi %s1112_s15, %s1463_s15   ;;  %s1063_s14 = sphi %s1110_s14, %s1462_s14   ;;  %s1059_s13 = sphi %s1108_s13, %s1461_s13   ;;  %s1055_s12 = sphi %s1106_s12, %s1460_s12  }
   0xb   : > { %s38_s20 = sadd.s32 1, %s1071_s16  ;;  %s47_s21 = sadd.s32 1, %s1063_s14 }
   0xc   : > { %p40_p0 = scmp.ge.s32.totalorder %s38_s20, 2  ;;  %p54_p1 = scmp.ne.s32.totalorder %s1063_s14, %s1059_s13 }
   0xd   : > { %p55_p2 = scmp.eq.s32.totalorder %s1075_s17, 0  ;;  %p60_p3 = scmp.ne.s32.totalorder %s1059_s13, %s1055_s12 }
   0xe   : > { %s1466_s20 = smov (%p40_p0, %s38_s20), 0  ;;  %p61_p5 = scmp.eq.s32.totalorder %s743_s18, 0 }
   0xf   : > { %p1147_p4 = por %p55_p2, %p54_p1  ;;  %s42_s23 = ssub.s32 %s1071_s16, %s1466_s20 }
  0x10   : > { %p112_p6 = scmp.eq.s32.totalorder %s743_s18, 1  ;;  %p45_p7 = scmp.eq.s32.totalorder %s42_s23, 0 }
  0x11   : > { %p1153_p8 = por %p61_p5, %p60_p3  ;;  %p118_p10 = scmp.eq.s32.totalorder %s744_s19, 1 }
  0x12   : > { %p1157_p9 = por %p112_p6, %p54_p1  ;;  %p816_p13 = scmp.lt.s32.totalorder %s1075_s17, 2 }
  0x13   : > { %s1450_s24 = scalar_select %p1153_p8, 1, 0 }
  0x14   : > { %s1451_s25 = scalar_select %p1157_p9, 1, 0 }
  0x15   : > { %s1162_s26 = scalar_select %p45_p7, %s1063_s14, %s47_s21  }
  0x16   : > { %p1164_p11 = por %p118_p10, %p60_p3  ;;  %s1171_s28 = sand.u32 1, %s1063_s14  }
  0x17   : > { %s747_s29 = sshll.u32 %s1171_s28, 3  ;;  %s766_s30 = sshll.u32 %s1071_s16, 7 }
  0x18   : > { %s1452_s27 = scalar_select %p1164_p11, 1, 0 }
  0x19   : > { %s1178_s6 = scalar_lea.hbm %s1443_s0, %s766_s30  ;;  %s168_s7 = scalar_lea.vmem [#allocation6], %s747_s29 }
  0x1a   : > { %s176_s8 = sshll.u32 %s168_s7, 4  ;;  %p1184_p0 = pnand %p816_p13, %p1147_p4  ;;  %s1180_s8 = int_to_ptr.vmem [resolvable:$true] %s176_s8 }
  0x1b   : > { %s165_s10 = scalar_lea.sflag [#allocation7], %s1171_s28  ;;  %s897_s11 = scalar_lea.hbm %s1178_s6, 128 }
  0x1c   : > { %p898_p2 = scmp.ne.s32.totalorder %s1178_s6, %s897_s11  ;;  %p899_p3 = pneg %p1184_p0 }
  0x1d   : > { %s902_s21 = scalar_lea.hbm %s1443_s0, 256  ;;  %p903_p4 = scmp.lt.u32.totalorder %s1178_s6, %s1443_s0 }
  0x1e   : > { %p900_p5 = pnand %p899_p3, %p898_p2  ;;  %p904_p7 = scmp.lt.u32.totalorder %s902_s21, %s897_s11 }
  0x1f   : > { %p906_p13 = scmp.lt.u32.totalorder %s897_s11, %s1178_s6 }
  0x20   : > { %p901_p6 = pneg %p900_p5  ;;  %p905_p10 = por %p904_p7, %p903_p4 }
  0x22   : > { %p907_p12 = por %p906_p13, %p905_p10 }
  0x24   : > { %p908_p1 = pnand %p907_p12, %p901_p6 }
  0x26   : > { %911 = shalt.err (!%p908_p1)
}
  0x27   : > { %s912_s29 = scalar_lea.vmem %s1180_s8, 128  ;;  %s1077_s30 = smov [#allocation6]  }
  0x28   : > { %p913_p2 = scmp.ne.s32.totalorder %s1180_s8, %s912_s29  ;;  %s917_s4 = sshll.u32 %s1077_s30, 4  ;;  %s918_s4 = int_to_ptr.vmem [resolvable:$false] %s917_s4 }
  0x29   : > { %s919_s5 = scalar_lea.vmem %s918_s4, 256  ;;  %p920_p9 = scmp.lt.s32.totalorder %s1180_s8, %s918_s4 }
  0x2a   : > { %p915_p5 = pnand %p913_p2, %p899_p3  ;;  %p921_p4 = scmp.lt.s32.totalorder %s919_s5, %s912_s29 }
  0x2c   : > { %p916_p11 = pneg %p915_p5  ;;  %p922_p7 = por %p921_p4, %p920_p9 }
  0x2e   : > { %p923_p10 = pnand %p922_p7, %p916_p11 }
  0x30   : > { %926 = shalt.err (!%p923_p10)
}
  0x31   : > { %s1078_s7 = smov 32   ;;  %s1079_s11 = smov 2  }
  0x32   : > { %805 = dma.hbm_to_vmem [thread:$0]  (!%p1184_p0), %s1178_s6, 128, %s1180_s8, %s165_s10, %s1078_s7, %s1078_s7, %s1079_s11  }
  0x33   : > { %p206_p12 = scmp.lt.s32.totalorder %s1075_s17, 3  ;;  %s750_s18 = sshll.u32 %s1171_s28, 2 }
  0x34   : > { %s767_s19 = sshll.u32 %s1071_s16, 6  ;;  %p1454_p9 = scmp.ge.s32.totalorder %s1075_s17, 1 }
  0x35   : > { %s1229_s29 = scalar_lea.hbm %s1444_s1, %s767_s19  ;;  %s190_s30 = scalar_lea.vmem [#allocation9], %s750_s18 }
  0x36   : > { %p1222_p11 = pnand %p1454_p9, %p206_p12  ;;  %s198_s4 = sshll.u32 %s190_s30, 4  ;;  %s1231_s4 = int_to_ptr.vmem [resolvable:$true] %s198_s4 }
  0x37   : > { %s187_s6 = scalar_lea.sflag [#allocation10], %s1171_s28  ;;  %s927_s8 = scalar_lea.hbm %s1229_s29, 64 }
  0x38   : > { %p928_p1 = scmp.ne.s32.totalorder %s1229_s29, %s927_s8  ;;  %s932_s7 = scalar_lea.hbm %s1444_s1, 128 }
  0x39   : > { %p933_p2 = scmp.lt.u32.totalorder %s1229_s29, %s1444_s1  ;;  %p934_p5 = scmp.lt.u32.totalorder %s932_s7, %s927_s8 }
  0x3a   : > { %p930_p6 = pnand %p928_p1, %p899_p3  ;;  %p936_p7 = scmp.lt.u32.totalorder %s927_s8, %s1229_s29 }
  0x3b   : > { %p935_p4 = por %p934_p5, %p933_p2 }
  0x3c   : > { %p931_p13 = pneg %p930_p6 }
  0x3d   : > { %p937_p10 = por %p936_p7, %p935_p4 }
  0x3f   : > { %p938_p12 = pnand %p937_p10, %p931_p13 }
  0x41   : > { %941 = shalt.err (!%p938_p12)
}
  0x42   : > { %s942_s18 = scalar_lea.vmem %s1231_s4, 64  ;;  %s1080_s22 = smov [#allocation9]  }
  0x43   : > { %p943_p9 = scmp.ne.s32.totalorder %s1231_s4, %s942_s18  ;;  %s947_s23 = sshll.u32 %s1080_s22, 4  ;;  %s948_s23 = int_to_ptr.vmem [resolvable:$false] %s947_s23 }
  0x44   : > { %s949_s30 = scalar_lea.vmem %s948_s23, 128  ;;  %p950_p8 = scmp.lt.s32.totalorder %s1231_s4, %s948_s23 }
  0x45   : > { %p945_p1 = pnand %p943_p9, %p899_p3  ;;  %p951_p2 = scmp.lt.s32.totalorder %s949_s30, %s942_s18 }
  0x47   : > { %p946_p6 = pneg %p945_p1  ;;  %p952_p5 = por %p951_p2, %p950_p8 }
  0x49   : > { %p953_p4 = pnand %p952_p5, %p946_p6 }
  0x4b   : > { %956 = shalt.err (!%p953_p4)
}
  0x4c   : > { %s1081_s8 = smov 16   ;;  %s1082_s10 = smov 1  }
  0x4d   : > { %808 = dma.hbm_to_vmem [thread:$0]  (!%p1184_p0), %s1229_s29, 64, %s1231_s4, %s187_s6, %s1081_s8, %s1081_s8, %s1082_s10  }
  0x4e   : > { %210 = sbr.rel (%p1222_p11) target bundleno = 402 (0x192), region = 28  ;;  %s1262_s5 = sand.u32 (!%p1222_p11), 1, %s1059_s13  }
  0x4f   : > { %s754_s7 = sshll.u32 (!%p1222_p11), %s1262_s5, 3  ;;  %s213_s11 = scalar_lea.sflag (!%p1222_p11), [#allocation7], %s1262_s5 }
  0x50   : > { %s1266_s19 = scalar_lea.vmem (!%p1222_p11), [#allocation6], %s754_s7  ;;  %p1456_p8 = scmp.ne.s32.totalorder (!%p1222_p11), %s1450_s24, 0 }
  0x55   : > { %1038 = dma.done.wait (%p1456_p8), %s213_s11, 128  }
  0x56   : > { %1040 = vsyncadd (%p1456_p8), %s213_s11, 4294967168  ;;  %s755_s28 = sshll.u32 %s1262_s5, 2  ;;  %s222_s9 = scalar_lea.sflag [#allocation10], %s1262_s5 }
  0x57   : > { %s1274_s21 = scalar_lea.vmem [#allocation9], %s755_s28 }
  0x58   : > { %1042 = dma.done.wait (%p1456_p8), %s222_s9, 64  }
  0x59   : > { %1044 = vsyncadd (%p1456_p8), %s222_s9, 4294967232  ;;  %v1083_v0 = vmov 0.0   ;;  %v760_v1 = vld [vmem:[%s1274_s21 + $0x2] sm:$0x1]  ;;  %v280_v2 = vld [vmem:[%s1274_s21] sm:$0x1] }
  0x5a   : > { %270 = vst [vmem:[#allocation4 + $0x4] sm:$0x3] %v1083_v0  ;;  %260 = vst [vmem:[#allocation2] sm:$0x3] %v1083_v0  ;;  %v759_v3 = vld [vmem:[%s1274_s21 + $0x1] sm:$0x1]  ;;  %v1283_v4 = vunpack.c.l.bf16 %v760_v1  ;;  %v1285_v6 = vunpack.c.l.bf16 %v280_v2 }
  0x5b   : > { %261 = vst [vmem:[#allocation2 + $0x2] sm:$0x3] %v1083_v0  ;;  %262 = vst [vmem:[#allocation2 + $0x4] sm:$0x3] %v1083_v0  ;;  %v1287_v8 = vunpack.c.l.bf16 %v759_v3  ;;  %v1290_v10 = vld [vmem:[%s1266_s19 + $0x4] sm:$0x3] }
  0x5c   : > { %263 = vst [vmem:[#allocation2 + $0x6] sm:$0x3] %v1083_v0  ;;  %264 = vst [vmem:[#allocation3] sm:$0x3] %v1083_v0  ;;  %v1293_v11 = vld [vmem:[%s1266_s19] sm:$0x3] }
  0x5d   : > { %265 = vst [vmem:[#allocation3 + $0x2] sm:$0x3] %v1083_v0  ;;  %266 = vst [vmem:[#allocation3 + $0x4] sm:$0x3] %v1083_v0  ;;  %v322_v15 = vmul.f32 0.5, %v1290_v10  ;;  %v291_v17 = vmul.f32 0.5, %v1293_v11 }
  0x5e   : > { %267 = vst [vmem:[#allocation3 + $0x6] sm:$0x3] %v1083_v0  ;;  %268 = vst [vmem:[#allocation4] sm:$0x3] %v1083_v0  ;;  %v1300_v16 = vld [vmem:[%s1266_s19 + $0x2] sm:$0x3] }
  0x5f   : > { %269 = vst [vmem:[#allocation4 + $0x2] sm:$0x3] %v1083_v0  ;;  %271 = vst [vmem:[#allocation4 + $0x6] sm:$0x3] %v1083_v0  ;;  %v305_v18 = vmul.f32 0.5, %v1300_v16  ;;  %v356_v19 = vmax.f32 %v1293_v11, %v1300_v16  ;;  %871 = vtanh.f32 %v322_v15  ;;  %vm395_vm0 = vcmask 1041408  }
  0x60   : > { %272 = vst [vmem:[#allocation5] sm:$0x3] %v1083_v0  ;;  %v1307_v20 = vld [vmem:[%s1266_s19 + $0x6] sm:$0x3]  ;;  %v761_v21 = vld [vmem:[%s1274_s21 + $0x3] sm:$0x1]  ;;  %873 = vtanh.f32 %v291_v17 }
  0x61   : > { %v336_v5 = vld [vmem:[#allocation4 + $0x4] sm:$0x3]  ;;  %v357_v22 = vmax.f32 %v356_v19, %v1290_v10  ;;  %v1311_v23 = vunpack.c.l.bf16 %v761_v21  ;;  %v339_v24 = vmul.f32 0.5, %v1307_v20  ;;  %875 = vtanh.f32 %v305_v18  ;;  %v295_v58 = vld [vmem:[#allocation2] sm:$0x3]  ;;  %s255_s19 = scalar_lea.vmem [#allocation12], %s1262_s5 }
  0x62   : > { %v337_v12 = vadd.f32 %v336_v5, %v1283_v4  ;;  %v327_v55 = vld [vmem:[#allocation2 + $0x4] sm:$0x3]  ;;  %v310_v62 = vld [vmem:[#allocation2 + $0x2] sm:$0x3]  ;;  %s614_s28 = sshll.u32 %s255_s19, 4  ;;  %s762_s9 = sshll.u32 %s1067_s15, 4  ;;  %s1357_s28 = int_to_ptr.vmem [resolvable:$true] %s614_s28 }
  0x63   : > { %877 = vtanh.f32 %v339_v24  ;;  %v1315_v26 = vmax.f32 %v357_v22, %v1307_v20  ;;  %v299_v50 = vld [vmem:[#allocation3] sm:$0x3]  ;;  %v344_v3 = vld [vmem:[#allocation2 + $0x6] sm:$0x3]  ;;  %s249_s21 = scalar_lea.vmem [#allocation11], %s1262_s5  ;;  %p1457_p3 = scmp.ne.s32.totalorder %s1451_s25, 0 }
  0x64   : > { %338 = vst [vmem:[#allocation4 + $0x4] sm:$0x3] %v337_v12  ;;  %v332_v46 = vld [vmem:[#allocation3 + $0x4] sm:$0x3]  ;;  %v315_v53 = vld [vmem:[#allocation3 + $0x2] sm:$0x3] }
  0x65   : > { %v302_v7 = vld [vmem:[#allocation4] sm:$0x3]  ;;  %v359_v28 = vsub.f32 %v1293_v11, %v1315_v26  ;;  %v362_v29 = vsub.f32 %v1300_v16, %v1315_v26  ;;  %v366_v30 = vsub.f32 %v1290_v10, %v1315_v26  ;;  %v370_v31 = vsub.f32 %v1307_v20, %v1315_v26  ;;  %v349_v60 = vld [vmem:[#allocation3 + $0x6] sm:$0x3] }
  0x66   : > { %v319_v9 = vld [vmem:[#allocation4 + $0x2] sm:$0x3]  ;;  %v303_v13 = vadd.f32 %v302_v7, %v1285_v6  ;;  %v353_v25 = vld [vmem:[#allocation4 + $0x6] sm:$0x3] }
  0x67   : > { %v320_v14 = vadd.f32 %v319_v9, %v1287_v8  ;;  %v354_v27 = vadd.f32 %v353_v25, %v1311_v23  ;;  %v360_v37 = vmul.f32 1.442695, %v359_v28  ;;  %v363_v38 = vmul.f32 1.442695, %v362_v29 }
  0x68   : > { %304 = vst [vmem:[#allocation4] sm:$0x3] %v303_v13  ;;  %v367_v39 = vmul.f32 1.442695, %v366_v30  ;;  %v371_v40 = vmul.f32 1.442695, %v370_v31 }
  0x69   : > { %321 = vst [vmem:[#allocation4 + $0x2] sm:$0x3] %v320_v14  ;;  %355 = vst [vmem:[#allocation4 + $0x6] sm:$0x3] %v354_v27  ;;  %v872_v41 = vpop.eup %871  ;;  %879 = vpow2.f32 %v360_v37 }
  0x6a   : > { %v874_v43 = vpop.eup %873  ;;  %v324_v44 = vadd.f32 1.0, %v872_v41  ;;  %881 = vpow2.f32 %v363_v38 }
  0x6b   : > { %v506_v32 = vld [vmem:[#allocation4 + $0x4] sm:$0x3]  ;;  %v876_v45 = vpop.eup %875  ;;  %v293_v47 = vadd.f32 1.0, %v874_v43  ;;  %883 = vpow2.f32 %v367_v39 }
  0x6c   : > { %v507_v35 = vsel %vm395_vm0, %v506_v32, 0.0  ;;  %v325_v49 = vmul.f32 0.5, %v324_v44  ;;  %v307_v51 = vadd.f32 1.0, %v876_v45  ;;  %885 = vpow2.f32 %v371_v40 }
  0x6d   : > { %508 = vadd.xlane.f32.xlu0 %v507_v35  ;;  %v878_v48 = vpop.eup %877  ;;  %v294_v52 = vmul.f32 0.5, %v293_v47 }
  0x6e   : > { %v341_v54 = vadd.f32 1.0, %v878_v48  ;;  %v333_v56 = vadd.f32 %v332_v46, %v325_v49  ;;  %v308_v57 = vmul.f32 0.5, %v307_v51  ;;  %v328_v59 = vmul.f32 %v325_v49, %v1283_v4 }
  0x6f   : > { %v419_v33 = vld [vmem:[#allocation4] sm:$0x3]  ;;  %v300_v61 = vadd.f32 %v299_v50, %v294_v52  ;;  %v296_v0 = vmul.f32 %v294_v52, %v1285_v6 }
  0x70   : > { %v462_v34 = vld [vmem:[#allocation4 + $0x2] sm:$0x3]  ;;  %v420_v36 = vsel %vm395_vm0, %v419_v33, 0.0  ;;  %v342_v63 = vmul.f32 0.5, %v341_v54  ;;  %334 = vst [vmem:[#allocation3 + $0x4] sm:$0x3] %v333_v56  ;;  %v316_v1 = vadd.f32 %v315_v53, %v308_v57  ;;  %v311_v2 = vmul.f32 %v308_v57, %v1287_v8 }
  0x71   : > { %421 = vadd.xlane.f32.xlu1 %v420_v36  ;;  %v463_v42 = vsel %vm395_vm0, %v462_v34, 0.0  ;;  %v329_v5 = vadd.f32 %v328_v59, %v327_v55  ;;  %301 = vst [vmem:[#allocation3] sm:$0x3] %v300_v61  ;;  %v297_v9 = vadd.f32 %v296_v0, %v295_v58  ;;  %v550_v38 = vld [vmem:[#allocation4 + $0x6] sm:$0x3] }
  0x72   : > { %v345_v7 = vmul.f32 %v342_v63, %v1311_v23  ;;  %v350_v12 = vadd.f32 %v349_v60, %v342_v63  ;;  %317 = vst [vmem:[#allocation3 + $0x2] sm:$0x3] %v316_v1  ;;  %v312_v13 = vadd.f32 %v311_v2, %v310_v62  ;;  %v551_v40 = vsel %vm395_vm0, %v550_v38, 0.0 }
  0x73   : > { %330 = vst [vmem:[#allocation2 + $0x4] sm:$0x3] %v329_v5  ;;  %v880_v14 = vpop.eup %879  ;;  %298 = vst [vmem:[#allocation2] sm:$0x3] %v297_v9 }
  0x74   : > { %v346_v15 = vadd.f32 %v345_v7, %v344_v3  ;;  %351 = vst [vmem:[#allocation3 + $0x6] sm:$0x3] %v350_v12  ;;  %v882_v17 = vpop.eup %881  ;;  %313 = vst [vmem:[#allocation2 + $0x2] sm:$0x3] %v312_v13 }
  0x75   : > { %464 = vadd.xlane.f32.xlu1 %v463_v42  ;;  %v884_v18 = vpop.eup %883  ;;  %v365_v19 = vadd.f32 %v882_v17, %v880_v14 }
  0x76   : > { %347 = vst [vmem:[#allocation2 + $0x6] sm:$0x3] %v346_v15  ;;  %v886_v21 = vpop.eup %885 }
  0x77   : > { %v494_v22 = vld [vmem:[#allocation3 + $0x4] sm:$0x3]  ;;  %v369_v24 = vadd.f32 %v884_v18, %v365_v19 }
  0x78   : > { %v495_v25 = vsel %vm395_vm0, %v494_v22, 0.0  ;;  %v407_v27 = vld [vmem:[#allocation3] sm:$0x3] }
  0x79   : > { %496 = vadd.xlane.f32.xlu1 %v495_v25  ;;  %v408_v28 = vsel %vm395_vm0, %v407_v27, 0.0  ;;  %v450_v29 = vld [vmem:[#allocation3 + $0x2] sm:$0x3]  ;;  %v373_v30 = vadd.f32 %v886_v21, %v369_v24 }
  0x7a   : > { %409 = vadd.xlane.f32.xlu0 %v408_v28  ;;  %v451_v31 = vsel %vm395_vm0, %v450_v29, 0.0  ;;  %v394_v35 = vld [vmem:[#allocation2] sm:$0x3]  ;;  %v482_v39 = vld [vmem:[#allocation2 + $0x4] sm:$0x3] }
  0x7b   : > { %v438_v32 = vld [vmem:[#allocation2 + $0x2] sm:$0x3]  ;;  %887 = vlog2.f32 %v373_v30  ;;  %v396_v37 = vsel %vm395_vm0, %v394_v35, 0.0  ;;  %v483_v41 = vsel %vm395_vm0, %v482_v39, 0.0  ;;  %v538_v42 = vld [vmem:[#allocation3 + $0x6] sm:$0x3] }
  0x7c   : > { %v439_v33 = vsel %vm395_vm0, %v438_v32, 0.0  ;;  %v539_v45 = vsel %vm395_vm0, %v538_v42, 0.0 }
  0x7d   : > { %v526_v34 = vld [vmem:[#allocation2 + $0x6] sm:$0x3]  ;;  %440 = vadd.xlane.f32.xlu1 %v439_v33 }
  0x7e   : > { %452 = vadd.xlane.f32.xlu0 %v451_v31  ;;  %v527_v36 = vsel %vm395_vm0, %v526_v34, 0.0 }
  0x81   : > { %528 = vadd.xlane.f32.xlu1 %v527_v36 }
  0x82   : > { %397 = vadd.xlane.f32.xlu0 %v396_v37 }
  0x85   : > { %v888_v43 = vpop.eup %887  ;;  %552 = vadd.xlane.f32.xlu1 %v551_v40 }
  0x86   : > { %484 = vadd.xlane.f32.xlu0 %v483_v41  ;;  %v375_v44 = vmul.f32 0.6931472, %v888_v43 }
  0x88   : > { %v376_v46 = vadd.f32 %v375_v44, %v1315_v26  ;;  %v388_v26 = vld [vmem:[#allocation5] sm:$0x3] }
  0x8a   : > { %540 = vadd.xlane.f32.xlu0 %v539_v45  ;;  %v377_v47 = vsub.f32 %v376_v46, %v1293_v11  ;;  %v379_v48 = vsub.f32 %v376_v46, %v1300_v16  ;;  %v382_v49 = vsub.f32 %v376_v46, %v1290_v10  ;;  %v385_v50 = vsub.f32 %v376_v46, %v1307_v20 }
  0x8c   : > { %v378_v51 = vmul.f32 %v377_v47, %v1285_v6  ;;  %v380_v52 = vmul.f32 %v379_v48, %v1287_v8  ;;  %v383_v53 = vmul.f32 %v382_v49, %v1283_v4  ;;  %v386_v55 = vmul.f32 %v385_v50, %v1311_v23 }
  0x8e   : > { %v381_v54 = vadd.f32 %v380_v52, %v378_v51 }
  0x90   : > { %v384_v56 = vadd.f32 %v383_v53, %v381_v54 }
  0x92   : > { %v387_v57 = vadd.f32 %v386_v55, %v384_v56 }
  0x94   : > { %v389_v58 = vadd.f32 %v388_v26, %v387_v57 }
  0x96   : > { %390 = vst [vmem:[#allocation5] sm:$0x3] %v389_v58 }
  0x9d   : > { %v570_v11 = vld [vmem:[#allocation5] sm:$0x3] }
  0x9e   : > { %v571_v16 = vsel %vm395_vm0, %v570_v11, 0.0 }
  0x9f   : > { %572 = vadd.xlane.f32.xlu0 %v571_v16 }
  0xfa   : > { %v509_v59 = vpop.xlane.xlu0 %508 }
  0xfb   : > { %v510_v3 = vrot.slane %v509_v59, 4 }
  0xfd   : > { %v511_v21 = vadd.f32 %v510_v3, %v509_v59 }
  0xfe   : > { %v422_v10 = vpop.xlane.xlu1 %421 }
  0xff   : > { %v423_v8 = vrot.slane %v422_v10, 4  ;;  %v512_v37 = vrot.slane %v511_v21, 2 }
 0x101   : > { %v424_v1 = vadd.f32 %v423_v8, %v422_v10  ;;  %v513_v55 = vadd.f32 %v512_v37, %v511_v21 }
 0x102   : > { %v465_v20 = vpop.xlane.xlu1 %464 }
 0x103   : > { %v466_v62 = vrot.slane %v465_v20, 4  ;;  %v425_v18 = vrot.slane %v424_v1, 2 }
 0x105   : > { %v467_v13 = vadd.f32 %v466_v62, %v465_v20  ;;  %v426_v36 = vadd.f32 %v425_v18, %v424_v1 }
 0x106   : > { %v497_v6 = vpop.xlane.xlu1 %496 }
 0x107   : > { %v410_v60 = vpop.xlane.xlu0 %409  ;;  %v498_v5 = vrot.slane %v497_v6, 4  ;;  %v468_v29 = vrot.slane %v467_v13, 2  ;;  %v427_v51 = vrot.slane %v426_v36, 1 }
 0x108   : > { %v411_v61 = vrot.slane %v410_v60, 4 }
 0x109   : > { %v499_v22 = vadd.f32 %v498_v5, %v497_v6  ;;  %v469_v47 = vadd.f32 %v468_v29, %v467_v13  ;;  %v428_v59 = vadd.f32 %v427_v51, %v426_v36 }
 0x10a   : > { %v441_v4 = vpop.xlane.xlu1 %440  ;;  %v412_v63 = vadd.f32 %v411_v61, %v410_v60 }
 0x10b   : > { %v453_v23 = vpop.xlane.xlu0 %452  ;;  %v442_v0 = vrot.slane %v441_v4, 4  ;;  %v500_v38 = vrot.slane %v499_v22, 2  ;;  %v470_v16 = vrot.slane %v469_v47, 1 }
 0x10c   : > { %v454_v2 = vrot.slane %v453_v23, 4  ;;  %v413_v14 = vrot.slane %v412_v63, 2 }
 0x10d   : > { %v443_v7 = vadd.f32 %v442_v0, %v441_v4  ;;  %v501_v54 = vadd.f32 %v500_v38, %v499_v22  ;;  %v471_v0 = vadd.f32 %v470_v16, %v469_v47 }
 0x10e   : > { %v455_v9 = vadd.f32 %v454_v2, %v453_v23  ;;  %v529_v12 = vpop.xlane.xlu1 %528  ;;  %v414_v33 = vadd.f32 %v413_v14, %v412_v63  ;;  %v514_v63 = vrot.slane %v513_v55, 1 }
 0x10f   : > { %v530_v15 = vrot.slane %v529_v12, 4  ;;  %v398_v17 = vpop.xlane.xlu0 %397  ;;  %v444_v24 = vrot.slane %v443_v7, 2  ;;  %v502_v61 = vrot.slane %v501_v54, 1 }
 0x110   : > { %v399_v19 = vrot.slane %v398_v17, 4  ;;  %v456_v25 = vrot.slane %v455_v9, 2  ;;  %v415_v46 = vrot.slane %v414_v33, 1 }
 0x111   : > { %v531_v30 = vadd.f32 %v530_v15, %v529_v12  ;;  %v445_v40 = vadd.f32 %v444_v24, %v443_v7  ;;  %v503_v3 = vadd.f32 %v502_v61, %v501_v54  ;;  %v515_v7 = vadd.f32 %v514_v63, %v513_v55 }
 0x112   : > { %v400_v27 = vadd.f32 %v399_v19, %v398_v17  ;;  %v553_v28 = vpop.xlane.xlu1 %552  ;;  %v457_v43 = vadd.f32 %v456_v25, %v455_v9  ;;  %v416_v11 = vadd.f32 %v415_v46, %v414_v33 }
 0x113   : > { %v554_v31 = vrot.slane %v553_v28, 4  ;;  %v485_v32 = vpop.xlane.xlu0 %484  ;;  %v532_v44 = vrot.slane %v531_v30, 2  ;;  %v446_v53 = vrot.slane %v445_v40, 1 }
 0x114   : > { %v401_v34 = vrot.slane %v400_v27, 2  ;;  %v486_v35 = vrot.slane %v485_v32, 4  ;;  %v458_v57 = vrot.slane %v457_v43, 1 }
 0x115   : > { %v555_v39 = vadd.f32 %v554_v31, %v553_v28  ;;  %v533_v10 = vadd.f32 %v532_v44, %v531_v30  ;;  %v447_v8 = vadd.f32 %v446_v53, %v445_v40 }
 0x116   : > { %v487_v41 = vadd.f32 %v486_v35, %v485_v32  ;;  %v402_v42 = vadd.f32 %v401_v34, %v400_v27  ;;  %v459_v4 = vadd.f32 %v458_v57, %v457_v43 }
 0x117   : > { %v541_v45 = vpop.xlane.xlu0 %540  ;;  %v556_v52 = vrot.slane %v555_v39, 2  ;;  %v534_v1 = vrot.slane %v533_v10, 1 }
 0x118   : > { %v488_v48 = vrot.slane %v487_v41, 2  ;;  %v542_v49 = vrot.slane %v541_v45, 4  ;;  %v403_v50 = vrot.slane %v402_v42, 1 }
 0x119   : > { %v557_v60 = vadd.f32 %v556_v52, %v555_v39  ;;  %v535_v12 = vadd.f32 %v534_v1, %v533_v10 }
 0x11a   : > { %v543_v56 = vadd.f32 %v542_v49, %v541_v45  ;;  %v404_v26 = vadd.f32 %v403_v50, %v402_v42  ;;  %v489_v58 = vadd.f32 %v488_v48, %v487_v41 }
 0x11b   : > { %v558_v5 = vrot.slane %v557_v60, 1 }
 0x11c   : > { %v544_v20 = vrot.slane %v543_v56, 2  ;;  %768 = vpush %v404_v26  ;;  %v490_v6 = vrot.slane %v489_v58, 1 }
 0x11d   : > { %770 = vpush %v416_v11  ;;  %v559_v13 = vadd.f32 %v558_v5, %v557_v60 }
 0x11e   : > { %772 = vpush %v428_v59  ;;  %v491_v62 = vadd.f32 %v490_v6, %v489_v58  ;;  %v545_v23 = vadd.f32 %v544_v20, %v543_v56 }
 0x11f   : > { %774 = vpush %v447_v8 }
 0x120   : > { %776 = vpush %v459_v4  ;;  %v546_v2 = vrot.slane %v545_v23, 1 }
 0x121   : > { %778 = vpush %v471_v0 }
 0x122   : > { %780 = vpush %v491_v62  ;;  %v547_v9 = vadd.f32 %v546_v2, %v545_v23 }
 0x123   : > { %782 = vpush %v503_v3 }
 0x124   : > { %784 = vpush %v515_v7 }
 0x125   : > { %786 = vpush %v535_v12 }
 0x126   : > { %788 = vpush %v547_v9 }
 0x127   : > { %790 = vpush %v559_v13 }
 0x12c   : > { %v573_v14 = vpop.xlane.xlu0 %572 }
 0x12d   : > { %v574_v15 = vrot.slane %v573_v14, 4 }
 0x12f   : > { %v575_v17 = vadd.f32 %v574_v15, %v573_v14 }
 0x131   : > { %v576_v18 = vrot.slane %v575_v17, 2 }
 0x133   : > { %v577_v19 = vadd.f32 %v576_v18, %v575_v17 }
 0x135   : > { %v578_v21 = vrot.slane %v577_v19, 1 }
 0x137   : > { %v579_v22 = vadd.f32 %v578_v21, %v577_v19 }
 0x139   : > { %792 = vpush %v579_v22 }
 0x14d   : > { %s1352_s24 = spop %768 }
 0x14e   : > { %s771_s29 = spop %770  ;;  %v406_v36 = vstv %s1352_s24  ;;  %s601_s24 = sshll.u32 %s249_s21, 4  ;;  %s1372_s24 = int_to_ptr.vmem [resolvable:$true] %s601_s24 }
 0x14f   : > { %v418_v24 = vstv %s771_s29  ;;  %s773_s4 = spop %772  ;;  %v431_v42 = vmul.f32 2.0, %v406_v36 }
 0x150   : > { %v430_v25 = vstv %s773_s4  ;;  %s775_s6 = spop %774 }
 0x151   : > { %v433_v27 = vadd.f32 %v430_v25, %v418_v24  ;;  %s777_s18 = spop %776  ;;  %v449_v40 = vstv %s775_s6  ;;  %v432_v47 = vadd.f32 1e-05, %v431_v42 }
 0x152   : > { %v461_v28 = vstv %s777_s18  ;;  %s779_s22 = spop %778  ;;  %v474_v44 = vmul.f32 2.0, %v449_v40  ;;  %s1365_s18 = scalar_lea.hbm %s1446_s3, %s762_s9 }
 0x153   : > { %v434_v29 = vadd.f32 1e-05, %v433_v27  ;;  %v473_v30 = vstv %s779_s22  ;;  %s781_s23 = spop %780 }
 0x154   : > { %v476_v31 = vadd.f32 %v473_v30, %v461_v28  ;;  %s783_s30 = spop %782  ;;  %v493_v45 = vstv %s781_s23  ;;  %v475_v51 = vadd.f32 1e-05, %v474_v44  ;;  %s1370_s23 = scalar_lea.hbm %s1445_s2, %s762_s9 }
 0x155   : > { %889 = vrcp.f32 %v434_v29  ;;  %v505_v32 = vstv %s783_s30  ;;  %s785_s8 = spop %784  ;;  %v518_v48 = vmul.f32 2.0, %v493_v45  ;;  %s589_s30 = scalar_lea.sflag [#allocation13], %s1262_s5 }
 0x156   : > { %v477_v33 = vadd.f32 1e-05, %v476_v31  ;;  %v517_v34 = vstv %s785_s8  ;;  %s787_s10 = spop %786  ;;  %s957_s8 = scalar_lea.vmem %s1357_s28, 16 }
 0x157   : > { %v520_v35 = vadd.f32 %v517_v34, %v505_v32  ;;  %s789_s7 = spop %788  ;;  %v537_v49 = vstv %s787_s10  ;;  %v519_v55 = vadd.f32 1e-05, %v518_v48  ;;  %p958_p0 = scmp.ne.s32.totalorder %s1357_s28, %s957_s8 }
 0x158   : > { %891 = vrcp.f32 %v477_v33  ;;  %v549_v37 = vstv %s789_s7  ;;  %s791_s11 = spop %790  ;;  %v562_v54 = vmul.f32 2.0, %v537_v49  ;;  %s1084_s10 = smov [#allocation12]  }
 0x159   : > { %v521_v38 = vadd.f32 1e-05, %v520_v35  ;;  %v561_v39 = vstv %s791_s11  ;;  %p959_p11 = pnand %p958_p0, %p1457_p3  ;;  %s961_s7 = sshll.u32 %s1084_s10, 4  ;;  %s962_s7 = int_to_ptr.vmem [resolvable:$false] %s961_s7 }
 0x15a   : > { %v564_v41 = vadd.f32 %v561_v39, %v549_v37  ;;  %v563_v11 = vadd.f32 1e-05, %v562_v54  ;;  %s963_s11 = scalar_lea.vmem %s962_s7, 32  ;;  %p964_p7 = scmp.lt.s32.totalorder %s1357_s28, %s962_s7 }
 0x15b   : > { %893 = vrcp.f32 %v521_v38  ;;  %p960_p13 = pneg %p959_p11  ;;  %p965_p10 = scmp.lt.s32.totalorder %s963_s11, %s957_s8 }
 0x15c   : > { %v565_v43 = vadd.f32 1e-05, %v564_v41 }
 0x15d   : > { %p966_p12 = por %p965_p10, %p964_p7 }
 0x15e   : > { %895 = vrcp.f32 %v565_v43 }
 0x15f   : > { %v890_v46 = vpop.eup %889  ;;  %p967_p9 = pnand %p966_p12, %p960_p13 }
 0x160   : > { %v436_v50 = vmul.f32 %v890_v46, %v432_v47 }
 0x162   : > { %v892_v52 = vpop.eup %891  ;;  %v437_v26 = vsub.f32 1.0, %v436_v50 }
 0x163   : > { %v479_v53 = vmul.f32 %v892_v52, %v475_v51 }
 0x165   : > { %v894_v56 = vpop.eup %893  ;;  %v480_v57 = vsub.f32 1.0, %v479_v53 }
 0x166   : > { %v523_v58 = vmul.f32 %v894_v56, %v519_v55 }
 0x167   : > { %v481_v20 = vadd.f32 %v480_v57, %v437_v26 }
 0x168   : > { %v896_v16 = vpop.eup %895  ;;  %v524_v10 = vsub.f32 1.0, %v523_v58 }
 0x169   : > { %v567_v59 = vmul.f32 %v896_v16, %v563_v11 }
 0x16a   : > { %s793_s29 = spop %792  ;;  %v525_v60 = vadd.f32 %v524_v10, %v481_v20 }
 0x16b   : > { %v582_v6 = vstv %s793_s29  ;;  %v568_v8 = vsub.f32 1.0, %v567_v59 }
 0x16c   : > { %583 = vst [vmem:[%s255_s19] sm:$0x1] %v582_v6 }
 0x16d   : > { %v569_v61 = vadd.f32 %v568_v8, %v525_v60 }
 0x16e   : > { %970 = shalt.err (!%p967_p9)
}
 0x16f   : > { %s971_s19 = scalar_lea.hbm %s1365_s18, 16  ;;  %s975_s4 = scalar_lea.hbm %s1446_s3, 32 }
 0x170   : > { %p972_p1 = scmp.ne.s32.totalorder %s1365_s18, %s971_s19  ;;  %p976_p5 = scmp.lt.u32.totalorder %s1365_s18, %s1446_s3 }
 0x171   : > { %p977_p4 = scmp.lt.u32.totalorder %s975_s4, %s971_s19  ;;  %p979_p0 = scmp.lt.u32.totalorder %s971_s19, %s1365_s18 }
 0x172   : > { %p973_p6 = pnand %p972_p1, %p1457_p3 }
 0x173   : > { %p978_p8 = por %p977_p4, %p976_p5 }
 0x174   : > { %p974_p2 = pneg %p973_p6 }
 0x175   : > { %p980_p11 = por %p979_p0, %p978_p8 }
 0x177   : > { %p981_p13 = pnand %p980_p11, %p974_p2 }
 0x179   : > { %984 = shalt.err (!%p981_p13)
}
 0x17a   : > { %799 = dma.vmem_to_hbm [thread:$0]  (%p1457_p3), %s1357_s28, 16, %s1365_s18, %s589_s30   ;;  %581 = vst [vmem:[%s249_s21] sm:$0x1] %v569_v61 }
 0x17b   : > { %s585_s22 = scalar_lea.sflag [#allocation8], %s1262_s5  ;;  %s985_s8 = scalar_lea.vmem %s1372_s24, 16 }
 0x17c   : > { %p986_p7 = scmp.ne.s32.totalorder %s1372_s24, %s985_s8  ;;  %s1085_s10 = smov [#allocation11]  }
 0x17d   : > { %s989_s7 = sshll.u32 %s1085_s10, 4  ;;  %s990_s7 = int_to_ptr.vmem [resolvable:$false] %s989_s7 }
 0x17e   : > { %p987_p10 = pnand %p986_p7, %p1457_p3  ;;  %s991_s11 = scalar_lea.vmem %s990_s7, 32 }
 0x17f   : > { %p992_p9 = scmp.lt.s32.totalorder %s1372_s24, %s990_s7  ;;  %p993_p1 = scmp.lt.s32.totalorder %s991_s11, %s985_s8 }
 0x180   : > { %p988_p12 = pneg %p987_p10 }
 0x181   : > { %p994_p6 = por %p993_p1, %p992_p9 }
 0x183   : > { %p995_p2 = pnand %p994_p6, %p988_p12 }
 0x185   : > { %998 = shalt.err (!%p995_p2)
}
 0x186   : > { %s999_s5 = scalar_lea.hbm %s1370_s23, 16  ;;  %s1003_s18 = scalar_lea.hbm %s1445_s2, 32 }
 0x187   : > { %p1000_p5 = scmp.ne.s32.totalorder %s1370_s23, %s999_s5  ;;  %p1004_p0 = scmp.lt.u32.totalorder %s1370_s23, %s1445_s2 }
 0x188   : > { %p1005_p11 = scmp.lt.u32.totalorder %s1003_s18, %s999_s5  ;;  %p1007_p7 = scmp.lt.u32.totalorder %s999_s5, %s1370_s23 }
 0x189   : > { %p1001_p4 = pnand %p1000_p5, %p1457_p3 }
 0x18a   : > { %p1006_p13 = por %p1005_p11, %p1004_p0 }
 0x18b   : > { %p1002_p8 = pneg %p1001_p4 }
 0x18c   : > { %p1008_p10 = por %p1007_p7, %p1006_p13 }
 0x18e   : > { %p1009_p12 = pnand %p1008_p10, %p1002_p8 }
 0x190   : > { %1012 = shalt.err (!%p1009_p12)
}
 0x191   : > { %798 = dma.vmem_to_hbm [thread:$0]  (%p1457_p3), %s1372_s24, 16, %s1370_s23, %s585_s22  }
 0x192 PF: > { %s626_s9 = sand.u32 1, %s1055_s12   ;;  %p1458_p9 = scmp.ne.s32.totalorder %s1452_s27, 0 }
 0x193   : > { %p1459_p1 = scmp.ge.s32.totalorder %s1075_s17, 2  ;;  %s627_s29 = scalar_lea.sflag [#allocation8], %s626_s9 }
 0x195   : > { %p810_p6 = pnand %p1459_p1, %p1458_p9 }
 0x197   : > { %1046 = dma.done.wait (!%p810_p6), %s627_s29, 16  }
 0x198   : > { %1048 = vsyncadd (!%p810_p6), %s627_s29, 4294967280  ;;  %s635_s4 = scalar_lea.sflag [#allocation13], %s626_s9 }
 0x199   : > { %1050 = dma.done.wait (!%p810_p6), %s635_s4, 16  }
 0x19a   : > { %1052 = vsyncadd (!%p810_p6), %s635_s4, 4294967280  ;;  %s26_s17 = sadd.s32 1, %s1075_s17   ;;  %s1460_s12 = smov %s1059_s13 }
 0x19b   : > { %p23_p2 = scmp.ge.s32.totalorder %s26_s17, 4   ;;  %s1461_s13 = smov %s1063_s14 }
 0x19c   : > { %s1462_s14 = smov %s1162_s26  ;;  %s1463_s15 = smov %s1071_s16 }
 0x19d   : > { %s1464_s16 = smov %s1466_s20  ;;  %25 = sbr.rel (!%p23_p2) target bundleno = 10 (0xa), region = 126 }
 0x1a4   :  { %639 = vsyncpa [#allocation7], 1 }
 0x1a5   :  { %641 = vsyncpa [#allocation7 + $0x1], 1 }
 0x1a6   :  { %642 = vsyncpa [#allocation10], 1 }
 0x1a7   :  { %644 = vsyncpa [#allocation10 + $0x1], 1 }
 0x1a8   :  { %645 = vsyncpa [#allocation8], 1 }
 0x1a9   :  { %647 = vsyncpa [#allocation8 + $0x1], 1 }
 0x1aa   :  { %648 = vsyncpa [#allocation13], 1 }
 0x1ab   :  { %650 = vsyncpa [#allocation13 + $0x1], 1 }

</bundles_post_ra>
